<compile_context>
chip_gen: v7x
topology: tpu7x:2x2x1
jax: 0.10.0
libtpu: 0.0.40
codegen_flags: <defaults>
</compile_context>

<pallas_src>
import functools

import jax
import jax.numpy as jnp
from jax import lax
from jax.experimental import pallas as pl
from jax.experimental.pallas import tpu as pltpu


# ---------------------------------------------------------------------------
# Fused kernels.  A spatially padded (Hp, Wp, C) image is stored flat as a
# (Hp*Wp, C) matrix; a 3x3 stride-1 conv then becomes 9 shifted contiguous
# slices, each one a (rows, C) @ (C, Cout) MXU matmul (f32 accumulation).
# ---------------------------------------------------------------------------

def _fused_stride1_kernel(*refs, H, W, Cout, has_proj):
    """Whole residual block for stride == 1 (in-kernel im2col for both convs)."""
    if has_proj:
        (xp_ref, w1_ref, b1_ref, w2_ref, b2_ref, mask_ref,
         wsc_ref, bsc_ref, o_ref, y1_ref) = refs
    else:
        (xp_ref, w1_ref, b1_ref, w2_ref, b2_ref, mask_ref,
         o_ref, y1_ref) = refs
        wsc_ref = bsc_ref = None

    Wp = W + 2                       # padded width
    L = (H - 1) * Wp + W             # flat span covering every real output pixel
    q0 = Wp + 1                      # flat index of output pixel (0, 0)

    # ---- conv1 + BN1 + ReLU (taps read from the VMEM-resident input tile) --
    acc = jnp.zeros((L, Cout), jnp.float32)
    for dy in range(3):
        for dx in range(3):
            off = dy * Wp + dx
            lhs = xp_ref[0, off:off + L, :]                       # (L, Cin) bf16
            acc = acc + jnp.dot(lhs, w1_ref[dy * 3 + dx],
                                preferred_element_type=jnp.float32)
    y1 = jnp.maximum(acc + b1_ref[...], 0.0) * mask_ref[...]

    # ---- stage zero-padded y1 in VMEM (no HBM round-trip between convs) ----
    y1_ref[...] = jnp.zeros_like(y1_ref)
    y1_ref[q0:q0 + L, :] = y1.astype(y1_ref.dtype)

    # ---- conv2 + BN2 --------------------------------------------------------
    acc2 = jnp.zeros((L, Cout), jnp.float32)
    for dy in range(3):
        for dx in range(3):
            off = dy * Wp + dx
            acc2 = acc2 + jnp.dot(y1_ref[off:off + L, :], w2_ref[dy * 3 + dx],
                                  preferred_element_type=jnp.float32)
    acc2 = acc2 + b2_ref[...]

    # ---- shortcut (identity or fused 1x1 projection) + add + ReLU ----------
    xs = xp_ref[0, q0:q0 + L, :]
    if has_proj:
        res = jnp.dot(xs, wsc_ref[...],
                      preferred_element_type=jnp.float32) + bsc_ref[...]
    else:
        res = xs.astype(jnp.float32)

    o_ref[...] = jnp.zeros_like(o_ref)
    o_ref[0, 1:1 + L, :] = jnp.maximum(acc2 + res, 0.0).astype(o_ref.dtype)


def _fused_strided_kernel(p1_ref, xs_ref, w1_ref, b1_ref, w2_ref, b2_ref,
                          wsc_ref, bsc_ref, mask_ref, o_ref, y1_ref,
                          *, Ho, Wo, Cout):
    """Whole residual block for stride != 1 (conv1 from wrapper im2col)."""
    OW = Wo + 2
    L = (Ho - 1) * OW + Wo

    # ---- conv1 + BN1 + ReLU (one matmul on the im2col'd patches) -----------
    acc = jnp.dot(p1_ref[0], w1_ref[...], preferred_element_type=jnp.float32)
    y1 = jnp.maximum(acc + b1_ref[...], 0.0) * mask_ref[...]

    y1_ref[...] = jnp.zeros_like(y1_ref)
    y1_ref[OW:OW + Ho * OW, :] = y1.astype(y1_ref.dtype)

    # ---- conv2 + BN2 (in-kernel im2col on the VMEM-resident y1) ------------
    acc2 = jnp.zeros((L, Cout), jnp.float32)
    for dy in range(3):
        for dx in range(3):
            off = dy * OW + dx
            acc2 = acc2 + jnp.dot(y1_ref[off:off + L, :], w2_ref[dy * 3 + dx],
                                  preferred_element_type=jnp.float32)
    acc2 = acc2 + b2_ref[...]

    # ---- projection shortcut + add + ReLU -----------------------------------
    res = jnp.dot(xs_ref[0, 1:1 + L, :], wsc_ref[...],
                  preferred_element_type=jnp.float32) + bsc_ref[...]

    o_ref[...] = jnp.zeros_like(o_ref)
    o_ref[0, 1:1 + L, :] = jnp.maximum(acc2 + res, 0.0).astype(o_ref.dtype)


# ---------------------------------------------------------------------------
# Wrapper glue: BN folding, weight re-layout, strided im2col (plain JAX)
# ---------------------------------------------------------------------------

def _fold_bn(gamma, beta, mean, var, eps=1e-5):
    scale = gamma / jnp.sqrt(var + eps)
    return scale, beta - mean * scale


def _taps_weight(w, scale):
    # (Cout, Cin, 3, 3) -> (9, Cin, Cout), BN scale folded, bf16 for the MXU.
    cout, cin = w.shape[0], w.shape[1]
    return (jnp.transpose(w, (2, 3, 1, 0)) * scale).reshape(
        9, cin, cout).astype(jnp.bfloat16)


def _im2col_strided(x_nhwc, stride):
    """im2col for the strided 3x3 / pad-1 conv only (output resolution)."""
    N, H, W, C = x_nhwc.shape
    Ho = (H - 1) // stride + 1
    Wo = (W - 1) // stride + 1
    xp = jnp.pad(x_nhwc, ((0, 0), (1, 1), (1, 1), (0, 0)))
    cols = []
    for dy in range(3):
        for dx in range(3):
            cols.append(xp[:, dy:dy + (Ho - 1) * stride + 1:stride,
                           dx:dx + (Wo - 1) * stride + 1:stride, :])
    return jnp.concatenate(cols, axis=-1), Ho, Wo      # (N, Ho, Wo, 9*C)


def residual_block1_forward(x_nchw, params, stride):
    """Pallas implementation of ResidualBlock1.forward (inference-mode BN)."""
    # TODO(synk): keep activations NHWC between blocks to drop these transposes.
    x = jnp.transpose(x_nchw, (0, 2, 3, 1)).astype(jnp.float32)
    N, H, W, Cin = x.shape
    Cout = params["w1"].shape[0]
    has_proj = (stride != 1) or (Cin != Cout)

    s1, b1 = _fold_bn(*params["bn1"])
    s2, b2 = _fold_bn(*params["bn2"])
    b1 = b1.reshape(1, Cout).astype(jnp.float32)
    b2 = b2.reshape(1, Cout).astype(jnp.float32)
    w2_taps = _taps_weight(params["w2"], s2)
    if has_proj:
        ssc, bb = _fold_bn(*params["bnsc"])
        wsc = (params["wsc"][:, :, 0, 0].T * ssc).astype(jnp.bfloat16)
        bsc = (params["bsc"] * ssc + bb).reshape(1, Cout).astype(jnp.float32)

    Ho = (H - 1) // stride + 1
    Wo = (W - 1) // stride + 1
    OW = Wo + 2                                  # padded output width
    L = (Ho - 1) * OW + Wo

    # column mask over the flat (Ho, OW) layout: zero the 2 wrap columns/row.
    col = jnp.arange(Ho * OW, dtype=jnp.int32) % OW
    mask_rows = ((col >= 1) & (col <= Wo)).astype(jnp.float32).reshape(-1, 1)

    x_bf = x.astype(jnp.bfloat16)

    def full_spec(a):
        return pl.BlockSpec(a.shape, lambda n, _r=a.ndim: (0,) * _r)

    out_spec = pl.BlockSpec((1, Ho * OW, Cout), lambda n: (n, 0, 0))
    out_shape = jax.ShapeDtypeStruct((N, Ho * OW, Cout), jnp.float32)
    y1_scratch = pltpu.VMEM(((Ho + 2) * OW, Cout), jnp.bfloat16)

    if stride == 1:
        # Fully fused: in-kernel im2col for both convs; shortcut read from the
        # resident input tile.  Only HBM traffic: x once in, output once back.
        Wp = W + 2
        xp = jnp.pad(x_bf, ((0, 0), (1, 1), (1, 1), (0, 0)))
        xp = xp.reshape(N, (H + 2) * Wp, Cin)
        w1_taps = _taps_weight(params["w1"], s1)
        mask1 = mask_rows[1:1 + L]
        operands = [xp, w1_taps, b1, w2_taps, b2, mask1]
        in_specs = [pl.BlockSpec((1, (H + 2) * Wp, Cin), lambda n: (n, 0, 0)),
                    full_spec(w1_taps), full_spec(b1), full_spec(w2_taps),
                    full_spec(b2), full_spec(mask1)]
        if has_proj:
            operands += [wsc, bsc]
            in_specs += [full_spec(wsc), full_spec(bsc)]
        kernel = functools.partial(_fused_stride1_kernel, H=H, W=W, Cout=Cout,
                                   has_proj=has_proj)
    else:
        # Strided conv1: wrapper im2col at *output* resolution (bf16, 9*Cin
        # wide ~ one input-activation pass); conv2 + shortcut stay fused.
        p1, _, _ = _im2col_strided(x_bf, stride)            # (N, Ho, Wo, 9*Cin)
        p1 = jnp.pad(p1, ((0, 0), (0, 0), (1, 1), (0, 0)))
        p1 = p1.reshape(N, Ho * OW, 9 * Cin)
        w1_flat = (jnp.transpose(params["w1"], (2, 3, 1, 0))
                   .reshape(9 * Cin, Cout) * s1).astype(jnp.bfloat16)
        x_sub = jnp.pad(x_bf[:, ::stride, ::stride, :],
                        ((0, 0), (0, 0), (1, 1), (0, 0)))
        x_sub = x_sub.reshape(N, Ho * OW, Cin)
        operands = [p1, x_sub, w1_flat, b1, w2_taps, b2, wsc, bsc, mask_rows]
        in_specs = [pl.BlockSpec((1, Ho * OW, 9 * Cin), lambda n: (n, 0, 0)),
                    pl.BlockSpec((1, Ho * OW, Cin), lambda n: (n, 0, 0)),
                    full_spec(w1_flat), full_spec(b1), full_spec(w2_taps),
                    full_spec(b2), full_spec(wsc), full_spec(bsc),
                    full_spec(mask_rows)]
        kernel = functools.partial(_fused_strided_kernel, Ho=Ho, Wo=Wo,
                                   Cout=Cout)

    flops = 2 * N * Ho * Wo * Cout * (9 * Cin + 9 * Cout
                                      + (Cin if has_proj else 0))
    bytes_accessed = (sum(int(a.size) * a.dtype.itemsize for a in operands)
                      + N * Ho * OW * Cout * 4)

    out_flat = pl.pallas_call(
        kernel,
        out_shape=out_shape,
        grid=(N,),
        in_specs=in_specs,
        out_specs=out_spec,
        scratch_shapes=[y1_scratch],
        compiler_params=pltpu.CompilerParams(
            dimension_semantics=("parallel",)),
        cost_estimate=pl.CostEstimate(flops=int(flops), transcendentals=0,
                                      bytes_accessed=int(bytes_accessed)),
    )(*operands)

    out = out_flat.reshape(N, Ho, OW, Cout)[:, :, 1:1 + Wo, :]
    return jnp.transpose(out, (0, 3, 1, 2))                 # NHWC -> NCHW


# ---------------------------------------------------------------------------
# Pure-JAX reference (for the correctness check)
# ---------------------------------------------------------------------------

def _bn_ref(y, gamma, beta, mean, var, eps=1e-5):
    inv = gamma / jnp.sqrt(var + eps)
    return (y - mean[None, :, None, None]) * inv[None, :, None, None] \
        + beta[None, :, None, None]


def _ref_forward(x, params, stride):
    dn = ("NCHW", "OIHW", "NCHW")
    y = lax.conv_general_dilated(x, params["w1"], (stride, stride),
                                 ((1, 1), (1, 1)), dimension_numbers=dn)
    y = jnp.maximum(_bn_ref(y, *params["bn1"]), 0.0)
    y = lax.conv_general_dilated(y, params["w2"], (1, 1),
                                 ((1, 1), (1, 1)), dimension_numbers=dn)
    y = _bn_ref(y, *params["bn2"])
    Cin, Cout = x.shape[1], params["w1"].shape[0]
    if stride != 1 or Cin != Cout:
        r = lax.conv_general_dilated(x, params["wsc"], (stride, stride),
                                     ((0, 0), (0, 0)), dimension_numbers=dn)
        r = r + params["bsc"][None, :, None, None]
        r = _bn_ref(r, *params["bnsc"])
    else:
        r = x
    return jnp.maximum(y + r, 0.0)


# ---------------------------------------------------------------------------
# Main
# ---------------------------------------------------------------------------

if __name__ == "__main__":
    key = jax.random.PRNGKey(0)
    N, Cin, Cout, H, W = 2, 4, 8, 16, 16
    ks = jax.random.split(key, 16)

    def bn_params(k, c):
        k1, k2, k3, k4 = jax.random.split(k, 4)
        gamma = 1.0 + 0.1 * jax.random.normal(k1, (c,), jnp.float32)
        beta = 0.1 * jax.random.normal(k2, (c,), jnp.float32)
        mean = 0.1 * jax.random.normal(k3, (c,), jnp.float32)
        var = 1.0 + 0.1 * jnp.abs(jax.random.normal(k4, (c,), jnp.float32))
        return (gamma, beta, mean, var)

    def check(name, xin, params, stride):
        out = jax.block_until_ready(residual_block1_forward(xin, params, stride))
        ref = _ref_forward(xin, params, stride)
        assert out.shape == ref.shape, (name, out.shape, ref.shape)
        err = float(jnp.max(jnp.abs(out - ref)))
        # bf16 streamed operands (f32 accumulation) -> loosened tolerance.
        assert jnp.allclose(out, ref, atol=5e-2, rtol=5e-2), \
            f"{name}: max abs err {err}"

    # 1) projection shortcut, stride 2, Cin != Cout
    params_p = {
        "w1": 0.1 * jax.random.normal(ks[0], (Cout, Cin, 3, 3), jnp.float32),
        "bn1": bn_params(ks[1], Cout),
        "w2": 0.1 * jax.random.normal(ks[2], (Cout, Cout, 3, 3), jnp.float32),
        "bn2": bn_params(ks[3], Cout),
        "wsc": 0.1 * jax.random.normal(ks[4], (Cout, Cin, 1, 1), jnp.float32),
        "bsc": 0.1 * jax.random.normal(ks[5], (Cout,), jnp.float32),
        "bnsc": bn_params(ks[6], Cout),
    }
    x = jax.random.normal(ks[7], (N, Cin, H, W), jnp.float32)
    check("stride2-projection", x, params_p, 2)

    # 2) identity shortcut, stride 1, Cin == Cout
    params_i = {
        "w1": 0.1 * jax.random.normal(ks[8], (Cout, Cout, 3, 3), jnp.float32),
        "bn1": bn_params(ks[9], Cout),
        "w2": 0.1 * jax.random.normal(ks[10], (Cout, Cout, 3, 3), jnp.float32),
        "bn2": bn_params(ks[11], Cout),
    }
    x2 = jax.random.normal(ks[12], (N, Cout, H, W), jnp.float32)
    check("stride1-identity", x2, params_i, 1)

    # 3) projection shortcut, stride 1, Cin != Cout
    check("stride1-projection", x, params_p, 1)

    print("KERNEL_OK")
</pallas_src>

<mosaic_0001>
module attributes {stable_mosaic.version = 11 : i64} {
  func.func @_fused_strided_kernel(%arg0: i32, %arg1: memref<1x80x36xbf16, #tpu.memory_space<vmem>>, %arg2: memref<1x80x4xbf16, #tpu.memory_space<vmem>>, %arg3: memref<36x8xbf16, #tpu.memory_space<vmem>>, %arg4: memref<1x8xf32, #tpu.memory_space<vmem>>, %arg5: memref<9x8x8xbf16, #tpu.memory_space<vmem>>, %arg6: memref<1x8xf32, #tpu.memory_space<vmem>>, %arg7: memref<4x8xbf16, #tpu.memory_space<vmem>>, %arg8: memref<1x8xf32, #tpu.memory_space<vmem>>, %arg9: memref<80x1xf32, #tpu.memory_space<vmem>>, %arg10: memref<1x80x8xf32, #tpu.memory_space<vmem>>, %arg11: memref<100x8xbf16, #tpu.memory_space<vmem>>) attributes {dimension_semantics = [#tpu.dimension_semantics<parallel>], iteration_bounds = array<i64: 2>, scalar_prefetch = 0 : i64, scratch_operands = 1 : i64, tpu.core_type = #tpu.core_type<tc>, window_params = [{transform_indices = @transform_0, window_bounds = array<i64: 1, 80, 36>}, {transform_indices = @transform_1, window_bounds = array<i64: 1, 80, 4>}, {pipeline_mode = #tpu.pipeline_mode<synchronous>, transform_indices = @transform_2, window_bounds = array<i64: 36, 8>}, {pipeline_mode = #tpu.pipeline_mode<synchronous>, transform_indices = @transform_3, window_bounds = array<i64: 1, 8>}, {pipeline_mode = #tpu.pipeline_mode<synchronous>, transform_indices = @transform_4, window_bounds = array<i64: 9, 8, 8>}, {pipeline_mode = #tpu.pipeline_mode<synchronous>, transform_indices = @transform_5, window_bounds = array<i64: 1, 8>}, {pipeline_mode = #tpu.pipeline_mode<synchronous>, transform_indices = @transform_6, window_bounds = array<i64: 4, 8>}, {pipeline_mode = #tpu.pipeline_mode<synchronous>, transform_indices = @transform_7, window_bounds = array<i64: 1, 8>}, {pipeline_mode = #tpu.pipeline_mode<synchronous>, transform_indices = @transform_8, window_bounds = array<i64: 80, 1>}, {transform_indices = @transform_9, window_bounds = array<i64: 1, 80, 8>}]} {
    %c0 = arith.constant 0 : index
    %c0_0 = arith.constant 0 : index
    %c0_1 = arith.constant 0 : index
    %0 = vector.load %arg1[%c0, %c0_0, %c0_1] : memref<1x80x36xbf16, #tpu.memory_space<vmem>>, vector<1x80x36xbf16>
    %1 = vector.shape_cast %0 : vector<1x80x36xbf16> to vector<80x36xbf16>
    %c0_2 = arith.constant 0 : index
    %c0_3 = arith.constant 0 : index
    %2 = vector.load %arg3[%c0_2, %c0_3] : memref<36x8xbf16, #tpu.memory_space<vmem>>, vector<36x8xbf16>
    %cst = arith.constant dense<0.000000e+00> : vector<80x8xf32>
    %3 = tpu.matmul %1, %2, %cst {dimension_numbers = #tpu.dot_dimension_numbers<[1], [0], [0], [1], [0, 0, 1, 1], [], []>} : vector<80x36xbf16>, vector<36x8xbf16>, vector<80x8xf32> -> vector<80x8xf32>
    %c0_4 = arith.constant 0 : index
    %c0_5 = arith.constant 0 : index
    %4 = vector.load %arg4[%c0_4, %c0_5] : memref<1x8xf32, #tpu.memory_space<vmem>>, vector<1x8xf32>
    %5 = vector.broadcast %4 : vector<1x8xf32> to vector<80x8xf32>
    %6 = arith.addf %3, %5 : vector<80x8xf32>
    %cst_6 = arith.constant 0.000000e+00 : f32
    %7 = vector.broadcast %cst_6 : f32 to vector<80x8xf32>
    %8 = arith.maximumf %6, %7 : vector<80x8xf32>
    %c0_7 = arith.constant 0 : index
    %c0_8 = arith.constant 0 : index
    %9 = vector.load %arg9[%c0_7, %c0_8] : memref<80x1xf32, #tpu.memory_space<vmem>>, vector<80x1xf32>
    %10 = vector.broadcast %9 : vector<80x1xf32> to vector<80x8xf32>
    %11 = arith.mulf %8, %10 : vector<80x8xf32>
    %cst_9 = arith.constant 0.000000e+00 : bf16
    %12 = vector.broadcast %cst_9 : bf16 to vector<100x8xbf16>
    %c0_10 = arith.constant 0 : index
    %c0_11 = arith.constant 0 : index
    %13 = vector.load %arg11[%c0_10, %c0_11] : memref<100x8xbf16, #tpu.memory_space<vmem>>, vector<100x8xbf16>
    tpu.vector_store %arg11[%c0_10, %c0_11], %12 {strides = array<i32>} : memref<100x8xbf16, #tpu.memory_space<vmem>>, vector<100x8xbf16>,
    %14 = arith.truncf %11 : vector<80x8xf32> to vector<80x8xbf16>
    %c10 = arith.constant 10 : index
    %c0_12 = arith.constant 0 : index
    %15 = vector.load %arg11[%c10, %c0_12] : memref<100x8xbf16, #tpu.memory_space<vmem>>, vector<80x8xbf16>
    tpu.vector_store %arg11[%c10, %c0_12], %14 {strides = array<i32>} : memref<100x8xbf16, #tpu.memory_space<vmem>>, vector<80x8xbf16>,
    %cst_13 = arith.constant 0.000000e+00 : f32
    %16 = vector.broadcast %cst_13 : f32 to vector<78x8xf32>
    %c0_14 = arith.constant 0 : index
    %c0_15 = arith.constant 0 : index
    %17 = vector.load %arg11[%c0_14, %c0_15] : memref<100x8xbf16, #tpu.memory_space<vmem>>, vector<78x8xbf16>
    %c0_16 = arith.constant 0 : index
    %c0_17 = arith.constant 0 : index
    %c0_18 = arith.constant 0 : index
    %18 = vector.load %arg5[%c0_16, %c0_17, %c0_18] : memref<9x8x8xbf16, #tpu.memory_space<vmem>>, vector<1x8x8xbf16>
    %19 = vector.shape_cast %18 : vector<1x8x8xbf16> to vector<8x8xbf16>
    %cst_19 = arith.constant dense<0.000000e+00> : vector<78x8xf32>
    %20 = tpu.matmul %17, %19, %cst_19 {dimension_numbers = #tpu.dot_dimension_numbers<[1], [0], [0], [1], [0, 0, 1, 1], [], []>} : vector<78x8xbf16>, vector<8x8xbf16>, vector<78x8xf32> -> vector<78x8xf32>
    %21 = arith.addf %16, %20 : vector<78x8xf32>
    %c1 = arith.constant 1 : index
    %c0_20 = arith.constant 0 : index
    %22 = vector.load %arg11[%c1, %c0_20] : memref<100x8xbf16, #tpu.memory_space<vmem>>, vector<78x8xbf16>
    %c1_21 = arith.constant 1 : index
    %c0_22 = arith.constant 0 : index
    %c0_23 = arith.constant 0 : index
    %23 = vector.load %arg5[%c1_21, %c0_22, %c0_23] : memref<9x8x8xbf16, #tpu.memory_space<vmem>>, vector<1x8x8xbf16>
    %24 = vector.shape_cast %23 : vector<1x8x8xbf16> to vector<8x8xbf16>
    %cst_24 = arith.constant dense<0.000000e+00> : vector<78x8xf32>
    %25 = tpu.matmul %22, %24, %cst_24 {dimension_numbers = #tpu.dot_dimension_numbers<[1], [0], [0], [1], [0, 0, 1, 1], [], []>} : vector<78x8xbf16>, vector<8x8xbf16>, vector<78x8xf32> -> vector<78x8xf32>
    %26 = arith.addf %21, %25 : vector<78x8xf32>
    %c2 = arith.constant 2 : index
    %c0_25 = arith.constant 0 : index
    %27 = vector.load %arg11[%c2, %c0_25] : memref<100x8xbf16, #tpu.memory_space<vmem>>, vector<78x8xbf16>
    %c2_26 = arith.constant 2 : index
    %c0_27 = arith.constant 0 : index
    %c0_28 = arith.constant 0 : index
    %28 = vector.load %arg5[%c2_26, %c0_27, %c0_28] : memref<9x8x8xbf16, #tpu.memory_space<vmem>>, vector<1x8x8xbf16>
    %29 = vector.shape_cast %28 : vector<1x8x8xbf16> to vector<8x8xbf16>
    %cst_29 = arith.constant dense<0.000000e+00> : vector<78x8xf32>
    %30 = tpu.matmul %27, %29, %cst_29 {dimension_numbers = #tpu.dot_dimension_numbers<[1], [0], [0], [1], [0, 0, 1, 1], [], []>} : vector<78x8xbf16>, vector<8x8xbf16>, vector<78x8xf32> -> vector<78x8xf32>
    %31 = arith.addf %26, %30 : vector<78x8xf32>
    %c10_30 = arith.constant 10 : index
    %c0_31 = arith.constant 0 : index
    %32 = vector.load %arg11[%c10_30, %c0_31] : memref<100x8xbf16, #tpu.memory_space<vmem>>, vector<78x8xbf16>
    %c3 = arith.constant 3 : index
    %c0_32 = arith.constant 0 : index
    %c0_33 = arith.constant 0 : index
    %33 = vector.load %arg5[%c3, %c0_32, %c0_33] : memref<9x8x8xbf16, #tpu.memory_space<vmem>>, vector<1x8x8xbf16>
    %34 = vector.shape_cast %33 : vector<1x8x8xbf16> to vector<8x8xbf16>
    %cst_34 = arith.constant dense<0.000000e+00> : vector<78x8xf32>
    %35 = tpu.matmul %32, %34, %cst_34 {dimension_numbers = #tpu.dot_dimension_numbers<[1], [0], [0], [1], [0, 0, 1, 1], [], []>} : vector<78x8xbf16>, vector<8x8xbf16>, vector<78x8xf32> -> vector<78x8xf32>
    %36 = arith.addf %31, %35 : vector<78x8xf32>
    %c11 = arith.constant 11 : index
    %c0_35 = arith.constant 0 : index
    %37 = vector.load %arg11[%c11, %c0_35] : memref<100x8xbf16, #tpu.memory_space<vmem>>, vector<78x8xbf16>
    %c4 = arith.constant 4 : index
    %c0_36 = arith.constant 0 : index
    %c0_37 = arith.constant 0 : index
    %38 = vector.load %arg5[%c4, %c0_36, %c0_37] : memref<9x8x8xbf16, #tpu.memory_space<vmem>>, vector<1x8x8xbf16>
    %39 = vector.shape_cast %38 : vector<1x8x8xbf16> to vector<8x8xbf16>
    %cst_38 = arith.constant dense<0.000000e+00> : vector<78x8xf32>
    %40 = tpu.matmul %37, %39, %cst_38 {dimension_numbers = #tpu.dot_dimension_numbers<[1], [0], [0], [1], [0, 0, 1, 1], [], []>} : vector<78x8xbf16>, vector<8x8xbf16>, vector<78x8xf32> -> vector<78x8xf32>
    %41 = arith.addf %36, %40 : vector<78x8xf32>
    %c12 = arith.constant 12 : index
    %c0_39 = arith.constant 0 : index
    %42 = vector.load %arg11[%c12, %c0_39] : memref<100x8xbf16, #tpu.memory_space<vmem>>, vector<78x8xbf16>
    %c5 = arith.constant 5 : index
    %c0_40 = arith.constant 0 : index
    %c0_41 = arith.constant 0 : index
    %43 = vector.load %arg5[%c5, %c0_40, %c0_41] : memref<9x8x8xbf16, #tpu.memory_space<vmem>>, vector<1x8x8xbf16>
    %44 = vector.shape_cast %43 : vector<1x8x8xbf16> to vector<8x8xbf16>
    %cst_42 = arith.constant dense<0.000000e+00> : vector<78x8xf32>
    %45 = tpu.matmul %42, %44, %cst_42 {dimension_numbers = #tpu.dot_dimension_numbers<[1], [0], [0], [1], [0, 0, 1, 1], [], []>} : vector<78x8xbf16>, vector<8x8xbf16>, vector<78x8xf32> -> vector<78x8xf32>
    %46 = arith.addf %41, %45 : vector<78x8xf32>
    %c20 = arith.constant 20 : index
    %c0_43 = arith.constant 0 : index
    %47 = vector.load %arg11[%c20, %c0_43] : memref<100x8xbf16, #tpu.memory_space<vmem>>, vector<78x8xbf16>
    %c6 = arith.constant 6 : index
    %c0_44 = arith.constant 0 : index
    %c0_45 = arith.constant 0 : index
    %48 = vector.load %arg5[%c6, %c0_44, %c0_45] : memref<9x8x8xbf16, #tpu.memory_space<vmem>>, vector<1x8x8xbf16>
    %49 = vector.shape_cast %48 : vector<1x8x8xbf16> to vector<8x8xbf16>
    %cst_46 = arith.constant dense<0.000000e+00> : vector<78x8xf32>
    %50 = tpu.matmul %47, %49, %cst_46 {dimension_numbers = #tpu.dot_dimension_numbers<[1], [0], [0], [1], [0, 0, 1, 1], [], []>} : vector<78x8xbf16>, vector<8x8xbf16>, vector<78x8xf32> -> vector<78x8xf32>
    %51 = arith.addf %46, %50 : vector<78x8xf32>
    %c21 = arith.constant 21 : index
    %c0_47 = arith.constant 0 : index
    %52 = vector.load %arg11[%c21, %c0_47] : memref<100x8xbf16, #tpu.memory_space<vmem>>, vector<78x8xbf16>
    %c7 = arith.constant 7 : index
    %c0_48 = arith.constant 0 : index
    %c0_49 = arith.constant 0 : index
    %53 = vector.load %arg5[%c7, %c0_48, %c0_49] : memref<9x8x8xbf16, #tpu.memory_space<vmem>>, vector<1x8x8xbf16>
    %54 = vector.shape_cast %53 : vector<1x8x8xbf16> to vector<8x8xbf16>
    %cst_50 = arith.constant dense<0.000000e+00> : vector<78x8xf32>
    %55 = tpu.matmul %52, %54, %cst_50 {dimension_numbers = #tpu.dot_dimension_numbers<[1], [0], [0], [1], [0, 0, 1, 1], [], []>} : vector<78x8xbf16>, vector<8x8xbf16>, vector<78x8xf32> -> vector<78x8xf32>
    %56 = arith.addf %51, %55 : vector<78x8xf32>
    %c22 = arith.constant 22 : index
    %c0_51 = arith.constant 0 : index
    %57 = vector.load %arg11[%c22, %c0_51] : memref<100x8xbf16, #tpu.memory_space<vmem>>, vector<78x8xbf16>
    %c8 = arith.constant 8 : index
    %c0_52 = arith.constant 0 : index
    %c0_53 = arith.constant 0 : index
    %58 = vector.load %arg5[%c8, %c0_52, %c0_53] : memref<9x8x8xbf16, #tpu.memory_space<vmem>>, vector<1x8x8xbf16>
    %59 = vector.shape_cast %58 : vector<1x8x8xbf16> to vector<8x8xbf16>
    %cst_54 = arith.constant dense<0.000000e+00> : vector<78x8xf32>
    %60 = tpu.matmul %57, %59, %cst_54 {dimension_numbers = #tpu.dot_dimension_numbers<[1], [0], [0], [1], [0, 0, 1, 1], [], []>} : vector<78x8xbf16>, vector<8x8xbf16>, vector<78x8xf32> -> vector<78x8xf32>
    %61 = arith.addf %56, %60 : vector<78x8xf32>
    %c0_55 = arith.constant 0 : index
    %c0_56 = arith.constant 0 : index
    %62 = vector.load %arg6[%c0_55, %c0_56] : memref<1x8xf32, #tpu.memory_space<vmem>>, vector<1x8xf32>
    %63 = vector.broadcast %62 : vector<1x8xf32> to vector<78x8xf32>
    %64 = arith.addf %61, %63 : vector<78x8xf32>
    %c0_57 = arith.constant 0 : index
    %c1_58 = arith.constant 1 : index
    %c0_59 = arith.constant 0 : index
    %65 = vector.load %arg2[%c0_57, %c1_58, %c0_59] : memref<1x80x4xbf16, #tpu.memory_space<vmem>>, vector<1x78x4xbf16>
    %66 = vector.shape_cast %65 : vector<1x78x4xbf16> to vector<78x4xbf16>
    %c0_60 = arith.constant 0 : index
    %c0_61 = arith.constant 0 : index
    %67 = vector.load %arg7[%c0_60, %c0_61] : memref<4x8xbf16, #tpu.memory_space<vmem>>, vector<4x8xbf16>
    %cst_62 = arith.constant dense<0.000000e+00> : vector<78x8xf32>
    %68 = tpu.matmul %66, %67, %cst_62 {dimension_numbers = #tpu.dot_dimension_numbers<[1], [0], [0], [1], [0, 0, 1, 1], [], []>} : vector<78x4xbf16>, vector<4x8xbf16>, vector<78x8xf32> -> vector<78x8xf32>
    %c0_63 = arith.constant 0 : index
    %c0_64 = arith.constant 0 : index
    %69 = vector.load %arg8[%c0_63, %c0_64] : memref<1x8xf32, #tpu.memory_space<vmem>>, vector<1x8xf32>
    %70 = vector.broadcast %69 : vector<1x8xf32> to vector<78x8xf32>
    %71 = arith.addf %68, %70 : vector<78x8xf32>
    %cst_65 = arith.constant 0.000000e+00 : f32
    %72 = vector.broadcast %cst_65 : f32 to vector<1x80x8xf32>
    %c0_66 = arith.constant 0 : index
    %c0_67 = arith.constant 0 : index
    %c0_68 = arith.constant 0 : index
    %73 = vector.load %arg10[%c0_66, %c0_67, %c0_68] : memref<1x80x8xf32, #tpu.memory_space<vmem>>, vector<1x80x8xf32>
    tpu.vector_store %arg10[%c0_66, %c0_67, %c0_68], %72 {strides = array<i32>} : memref<1x80x8xf32, #tpu.memory_space<vmem>>, vector<1x80x8xf32>,
    %74 = arith.addf %64, %71 : vector<78x8xf32>
    %cst_69 = arith.constant 0.000000e+00 : f32
    %75 = vector.broadcast %cst_69 : f32 to vector<78x8xf32>
    %76 = arith.maximumf %74, %75 : vector<78x8xf32>
    %c0_70 = arith.constant 0 : index
    %c1_71 = arith.constant 1 : index
    %c0_72 = arith.constant 0 : index
    %77 = vector.load %arg10[%c0_70, %c1_71, %c0_72] : memref<1x80x8xf32, #tpu.memory_space<vmem>>, vector<1x78x8xf32>
    %78 = vector.shape_cast %77 : vector<1x78x8xf32> to vector<78x8xf32>
    %79 = vector.shape_cast %76 : vector<78x8xf32> to vector<1x78x8xf32>
    tpu.vector_store %arg10[%c0_70, %c1_71, %c0_72], %79 {strides = array<i32>} : memref<1x80x8xf32, #tpu.memory_space<vmem>>, vector<1x78x8xf32>,
    return
  }
  func.func @transform_0(%arg0: i32) -> (i32, i32, i32) {
    %c0_i32 = arith.constant 0 : i32
    %c0_i32_0 = arith.constant 0 : i32
    %c0_i32_1 = arith.constant 0 : i32
    return %arg0, %c0_i32, %c0_i32_0 : i32, i32, i32
  }
  func.func @transform_1(%arg0: i32) -> (i32, i32, i32) {
    %c0_i32 = arith.constant 0 : i32
    %c0_i32_0 = arith.constant 0 : i32
    %c0_i32_1 = arith.constant 0 : i32
    return %arg0, %c0_i32, %c0_i32_0 : i32, i32, i32
  }
  func.func @transform_2(%arg0: i32) -> (i32, i32) {
    %c0_i32 = arith.constant 0 : i32
    %c0_i32_0 = arith.constant 0 : i32
    %c0_i32_1 = arith.constant 0 : i32
    return %c0_i32, %c0_i32_0 : i32, i32
  }
  func.func @transform_3(%arg0: i32) -> (i32, i32) {
    %c0_i32 = arith.constant 0 : i32
    %c0_i32_0 = arith.constant 0 : i32
    %c0_i32_1 = arith.constant 0 : i32
    return %c0_i32, %c0_i32_0 : i32, i32
  }
  func.func @transform_4(%arg0: i32) -> (i32, i32, i32) {
    %c0_i32 = arith.constant 0 : i32
    %c0_i32_0 = arith.constant 0 : i32
    %c0_i32_1 = arith.constant 0 : i32
    %c0_i32_2 = arith.constant 0 : i32
    return %c0_i32, %c0_i32_0, %c0_i32_1 : i32, i32, i32
  }
  func.func @transform_5(%arg0: i32) -> (i32, i32) {
    %c0_i32 = arith.constant 0 : i32
    %c0_i32_0 = arith.constant 0 : i32
    %c0_i32_1 = arith.constant 0 : i32
    return %c0_i32, %c0_i32_0 : i32, i32
  }
  func.func @transform_6(%arg0: i32) -> (i32, i32) {
    %c0_i32 = arith.constant 0 : i32
    %c0_i32_0 = arith.constant 0 : i32
    %c0_i32_1 = arith.constant 0 : i32
    return %c0_i32, %c0_i32_0 : i32, i32
  }
  func.func @transform_7(%arg0: i32) -> (i32, i32) {
    %c0_i32 = arith.constant 0 : i32
    %c0_i32_0 = arith.constant 0 : i32
    %c0_i32_1 = arith.constant 0 : i32
    return %c0_i32, %c0_i32_0 : i32, i32
  }
  func.func @transform_8(%arg0: i32) -> (i32, i32) {
    %c0_i32 = arith.constant 0 : i32
    %c0_i32_0 = arith.constant 0 : i32
    %c0_i32_1 = arith.constant 0 : i32
    return %c0_i32, %c0_i32_0 : i32, i32
  }
  func.func @transform_9(%arg0: i32) -> (i32, i32, i32) {
    %c0_i32 = arith.constant 0 : i32
    %c0_i32_0 = arith.constant 0 : i32
    %c0_i32_1 = arith.constant 0 : i32
    return %arg0, %c0_i32, %c0_i32_0 : i32, i32, i32
  }
}

</mosaic_0001>

<bundles_post_ra>
// kernel: tpu_custom_call.1
= control target key start
LH: loop header
LB: loop body
LE: loop exit
PB: predicated region body
PF: predicated region fallthrough
CT: control target
= control target key end

     0   :  { %s3015_s30 = smov 0   ;;  %s3638_s0 = inlined_call_operand.vmem [shape: bf16[2,80,36], index: 0, kind: input, shape index: {}]   ;;  %s3639_s1 = inlined_call_operand.vmem [shape: bf16[2,80,4], index: 1, kind: input, shape index: {}]   ;;  %s3640_s2 = inlined_call_operand.vmem [shape: bf16[36,8], index: 2, kind: input, shape index: {}]   ;;  %s3641_s3 = inlined_call_operand.vmem [shape: f32[1,8], index: 3, kind: input, shape index: {}]   ;;  %s3642_s4 = inlined_call_operand.vmem [shape: bf16[9,8,8], index: 4, kind: input, shape index: {}]   ;;  %s3643_s5 = inlined_call_operand.vmem [shape: f32[1,8], index: 5, kind: input, shape index: {}]   ;;  %s3644_s6 = inlined_call_operand.vmem [shape: bf16[4,8], index: 6, kind: input, shape index: {}]   ;;  %s3645_s7 = inlined_call_operand.vmem [shape: f32[1,8], index: 7, kind: input, shape index: {}]   ;;  %s3646_s8 = inlined_call_operand.vmem [shape: f32[80,1], index: 8, kind: input, shape index: {}]   ;;  %s3647_s9 = inlined_call_operand.vmem [shape: f32[2,80,8], index: 9, kind: output, shape index: {}]  }
   0x1 LB: > { %s2259_s10 = sadd.s32 4294967295, %s2960_s30   ;;  %p2263_p0 = scmp.ge.s32.totalorder %s2960_s30, 1  ;;  %s2960_s30 = sphi %s3015_s30, %s19_s30  }
   0x2   : > { %p297_p1 = scmp.lt.s32.totalorder %s2960_s30, 3 }
   0x4   : > { %p298_p2 = pnand %p2263_p0, %p297_p1 }
   0x5   : > { %v2916_v0 = vld [vmem:[%s3640_s2] sm:$0xff] (!%p298_p2)   ;;  %v2962_v1 = vmov (!%p298_p2), 0.0   ;;  %v2917_v2 = vld [vmem:[%s3640_s2 + $0x8] sm:$0xff] (!%p298_p2)   ;;  %v2918_v3 = vld [vmem:[%s3640_s2 + $0x10] ss:$0 sps:$4 sm:$0x33] (!%p298_p2)  }
   0x6   : > { %301 = sbr.rel (%p298_p2) target bundleno = 718 (0x2ce), region = 56  ;;  %2463 = vmatprep.subr.bf16.mxu0 (!%p298_p2), %v2962_v1  ;;  %2709 = vmatprep.subr.bf16.mxu1 (!%p298_p2), %v2962_v1  ;;  %vm2963_vm0 = vmmov (!%p298_p2), 0   ;;  %p338_p3 = scmp.lt.s32.totalorder (!%p298_p2), %s2259_s10, 1  ;;  %v522_v4 = vld [vmem:[%s3646_s8 + $0x18] sm:$0xff] (!%p298_p2)  ;;  %v524_v5 = vld [vmem:[%s3646_s8 + $0x28] sm:$0xff] (!%p298_p2)  ;;  %vm432_vm1 = vcmask (!%p298_p2), 1041408  }
   0x7   : > { %2464 = vmatpush3.bf16.msra.mxu0 (!%p298_p2), %v2916_v0  ;;  %2469 = vmatprep.mubr.msk.bf16.mxu0 (!%p298_p2), %vm2963_vm0, %v2962_v1  ;;  %v2964_v6 = vmov (!%p298_p2), 0   ;;  %v523_v7 = vld [vmem:[%s3646_s8 + $0x20] sm:$0xff] (!%p298_p2)  ;;  %v525_v8 = vld [vmem:[%s3646_s8 + $0x30] sm:$0xff] (!%p298_p2)  ;;  %v434_v9 = vsel (!%p298_p2), %vm432_vm1, %v2918_v3, 0  ;;  %v526_v10 = vld [vmem:[%s3646_s8 + $0x38] sm:$0xff] (!%p298_p2)  ;;  %vm416_vm2 = vcmask (!%p298_p2), 293888  }
   0x8   : > { %2465 = vmatprep.subr.bf16.mxu0 (!%p298_p2), %v2962_v1  ;;  %2914 = vset.pattern.permute.xlu0 (!%p298_p2), %v2964_v6  ;;  %v527_v12 = vld [vmem:[%s3646_s8 + $0x40] sm:$0xff] (!%p298_p2)  ;;  %v528_v13 = vld [vmem:[%s3646_s8 + $0x48] sm:$0xff] (!%p298_p2)  ;;  %v521_v17 = vld [vmem:[%s3646_s8 + $0x10] sm:$0xff] (!%p298_p2)  ;;  %vm589_vm3 = vcmask (!%p298_p2), 60416   ;;  %vm785_vm4 = vcmask (!%p298_p2), 1043456   ;;  %vm769_vm5 = vcmask (!%p298_p2), 64512  }
   0x9   : > { %2915 = vset.pattern.permute.xlu1 (!%p298_p2), %v2964_v6  ;;  %546 = vperm.xlu0 (!%p298_p2), %2914, %v522_v4   ;;  %v519_v14 = vld [vmem:[%s3646_s8] sm:$0xff] (!%p298_p2)  ;;  %v520_v16 = vld [vmem:[%s3646_s8 + $0x8] sm:$0xff] (!%p298_p2)  ;;  %591 = vst.msk [vmem:[#allocation2 + $0x4] sm:$0xf] (!%p298_p2), %vm589_vm3, %v2964_v6  ;;  %590 = vst.msk [vmem:[#allocation2] sm:$0xf] (!%p298_p2), %vm589_vm3, %v2964_v6 }
   0xa   : > { %556 = vperm.xlu1 (!%p298_p2), %2915, %v524_v5   ;;  %2587 = vmatprep.mubr.msk.bf16.mxu1 (!%p298_p2), %vm2963_vm0, %v2962_v1  ;;  %592 = vst.msk [vmem:[#allocation2 + $0x8] sm:$0xf] (!%p298_p2), %vm589_vm3, %v2964_v6  ;;  %593 = vst.msk [vmem:[#allocation2 + $0xc] sm:$0xf] (!%p298_p2), %vm589_vm3, %v2964_v6  ;;  %v2291_v21 = vld [vmem:[%s3642_s4 + $0x4] sm:$0xf] (!%p298_p2) }
   0xb   : > { %2466 = vmatpush3.bf16.msra.mxu0 (!%p298_p2), %v2917_v2  ;;  %594 = vst.msk [vmem:[#allocation2 + $0x10] sm:$0xf] (!%p298_p2), %vm589_vm3, %v2964_v6  ;;  %595 = vst.msk [vmem:[#allocation2 + $0x14] sm:$0xf] (!%p298_p2), %vm589_vm3, %v2964_v6  ;;  %v787_v22 = vsel (!%p298_p2), %vm785_vm4, %v2291_v21, 0  ;;  %vm602_vm6 = vcmask (!%p298_p2), 58368  }
   0xc   : > { %2467 = vmatprep.subr.bf16.mxu0 (!%p298_p2), %v2962_v1  ;;  %596 = vst.msk [vmem:[#allocation2 + $0x18] sm:$0xf] (!%p298_p2), %vm589_vm3, %v2964_v6  ;;  %597 = vst.msk [vmem:[#allocation2 + $0x1c] sm:$0xf] (!%p298_p2), %vm589_vm3, %v2964_v6  ;;  %v2326_v23 = vld [vmem:[%s3642_s4 + $0x10] sm:$0xf] (!%p298_p2) }
   0xd   : > { %s3651_s10 = smov (!%p338_p3, %s2259_s10), 1  ;;  %551 = vperm.xlu0 %2914, %v523_v7   ;;  %598 = vst.msk [vmem:[#allocation2 + $0x20] sm:$0xf] %vm589_vm3, %v2964_v6  ;;  %599 = vst.msk [vmem:[#allocation2 + $0x24] sm:$0xf] %vm589_vm3, %v2964_v6  ;;  %v3177_v24 = vsel %vm785_vm4, %v2326_v23, 0 }
   0xe   : > { %s2901_s25 = smul.u32 40, %s3651_s10  ;;  %561 = vperm.xlu1 %2915, %v525_v8   ;;  %600 = vst.msk [vmem:[#allocation2 + $0x28] sm:$0xf] %vm589_vm3, %v2964_v6  ;;  %601 = vst.msk [vmem:[#allocation2 + $0x2c] sm:$0xf] %vm589_vm3, %v2964_v6  ;;  %2710 = vmatpush3.bf16.msra.mxu1 %v3177_v24  ;;  %vm634_vm7 = vcmask 1040384  }
   0xf   : > { %2468 = vmatpush3.bf16.msra.mxu0 %v434_v9  ;;  %603 = vst.msk [vmem:[#allocation2 + $0x30] sm:$0x3] %vm602_vm6, %v2964_v6  ;;  %2599 = vmatprep.subr.bf16.mxu1 %v2962_v1  ;;  %v3192_v31 = vld [vmem:[%s3641_s3] ss:$0 sm:$0xff]  ;;  %vm635_vm8 = vcmask 1044484   ;;  %vm677_vm9 = vcmask 60417  }
  0x10   : > { %s3061_s28 = scalar_lea.vmem %s3638_s0, %s2901_s25  ;;  %2489 = vmatprep.subr.bf16.mxu0 %v2962_v1  ;;  %s3078_s18 = scalar_lea.vmem %s3639_s1, %s2901_s25  ;;  %vm3199_vm10 = vmor %vm634_vm7, %vm635_vm8  ;;  %v690_v7 = vld [vmem:[#allocation2] sm:$0xf]  ;;  %vm729_vm11 = vsmask.f32 7424  ;;  %vm958_vm12 = vcmask 1046528   ;;  %vm688_vm13 = vcmask 57344  }
  0x11   : > { %v2919_v11 = vld [vmem:[%s3061_s28] sm:$0xff]   ;;  %566 = vperm.xlu0 %2914, %v526_v10   ;;  %v2920_v15 = vld [vmem:[%s3061_s28 + $0x8] sm:$0xff]   ;;  %v2921_v18 = vld [vmem:[%s3061_s28 + $0x10] sm:$0xff]   ;;  %s2902_s25 = smul.u32 80, %s3651_s10  ;;  %vm1257_vm14 = vsmask.f32 6400 }
  0x12   : > { %2470 = vmatmul.mubr.msk.bf16.vlgmr.msra.gmra.mrb[0].mxu0 %vm416_vm2, %v2919_v11  ;;  %571 = vperm.xlu1 %2915, %v527_v12   ;;  %v2922_v19 = vld [vmem:[%s3061_s28 + $0x18] sm:$0xff]   ;;  %v2923_v20 = vld [vmem:[%s3061_s28 + $0x20] sm:$0xff]   ;;  %vm1847_vm15 = vcmask 1044480  }
  0x13   : > { %2473 = vmatprep.mubr.msk.bf16.mxu0 %vm2963_vm0, %v2962_v1  ;;  %s3139_s11 = scalar_lea.vmem %s3647_s9, %s2902_s25  ;;  %2490 = vmatpush3.bf16.msra.mxu0 %v787_v22  ;;  %v952_v22 = vld [vmem:[#allocation2] sm:$0xe] }
  0x14   : > { %2511 = vmatprep.subr.bf16.mxu0 %v2962_v1  ;;  %2151 = vst.msk [vmem:[%s3139_s11] sm:$0xff] %vm769_vm5, %v2962_v1  ;;  %2152 = vst.msk [vmem:[%s3139_s11 + $0x8] sm:$0xff] %vm769_vm5, %v2962_v1 }
  0x15   : > { %576 = vperm.xlu0 %2914, %v528_v13   ;;  %2153 = vst.msk [vmem:[%s3139_s11 + $0x10] sm:$0xff] %vm769_vm5, %v2962_v1  ;;  %2154 = vst.msk [vmem:[%s3139_s11 + $0x18] sm:$0xff] %vm769_vm5, %v2962_v1 }
  0x16   : > { %531 = vperm.xlu1 %2915, %v519_v14   ;;  %2155 = vst.msk [vmem:[%s3139_s11 + $0x20] sm:$0xff] %vm769_vm5, %v2962_v1  ;;  %2156 = vst.msk [vmem:[%s3139_s11 + $0x28] sm:$0xff] %vm769_vm5, %v2962_v1 }
  0x17   : > { %2157 = vst.msk [vmem:[%s3139_s11 + $0x30] sm:$0xff] %vm769_vm5, %v2962_v1  ;;  %2158 = vst.msk [vmem:[%s3139_s11 + $0x38] sm:$0xff] %vm769_vm5, %v2962_v1 }
  0x18   : > { %2159 = vst.msk [vmem:[%s3139_s11 + $0x40] sm:$0xff] %vm769_vm5, %v2962_v1  ;;  %2160 = vst.msk [vmem:[%s3139_s11 + $0x48] sm:$0xff] %vm769_vm5, %v2962_v1 }
  0x19   : > { %536 = vperm.xlu0 %2914, %v520_v16  }
  0x1a   : > { %2474 = vmatmul.mubr.msk.bf16.gmra.mrb[4].mxu0 %vm416_vm2, %v2920_v15  ;;  %541 = vperm.xlu1 %2915, %v521_v17  }
  0x1b   : > { %2477 = vmatprep.mubr.msk.bf16.mxu0 %vm2963_vm0, %v2962_v1 }
  0x22   : > { %2478 = vmatmul.mubr.msk.bf16.gmra.mrb[8].mxu0 %vm416_vm2, %v2921_v18 }
  0x23   : > { %2481 = vmatprep.mubr.msk.bf16.mxu0 %vm2963_vm0, %v2962_v1 }
  0x2a   : > { %2482 = vmatmul.mubr.msk.bf16.gmra.mrb[12].mxu0 %vm416_vm2, %v2922_v19 }
  0x2b   : > { %2485 = vmatprep.mubr.msk.bf16.mxu0 %vm2963_vm0, %v2962_v1 }
  0x32   : > { %2486 = vmatmul.mubr.msk.bf16.gmra.mrb[16].mxu0 %vm416_vm2, %v2923_v20  ;;  %vm1414_vm2 = vcmask 1045504  }
  0x33   : > { %2491 = vmatprep.mubr.msk.bf16.mxu0 %vm2963_vm0, %v2962_v1 }
  0x88   : > { %v547_v25 = vpop.permute.xlu0 %546 }
  0x89   : > { %v3181_v26 = vpop.permute.xlu1 %556 }
  0x8c   : > { %v552_v27 = vpop.permute.xlu0 %551 }
  0x8d   : > { %v3183_v28 = vpop.permute.xlu1 %561 }
  0x90   : > { %v3185_v29 = vpop.permute.xlu0 %566 }
  0x91   : > { %v3187_v30 = vpop.permute.xlu1 %571 }
  0x94   : > { %v3194_v32 = vpop.permute.xlu0 %576 }
  0x95   : > { %v532_v37 = vpop.permute.xlu1 %531 }
  0x98   : > { %v537_v41 = vpop.permute.xlu0 %536 }
  0x99   : > { %v542_v53 = vpop.permute.xlu1 %541 }
  0xe5   : > { %v470_v33 = vpop.f32.mrb[0].mxu0 }
  0xe6   : > { %v471_v34 = vadd.f32 %v3192_v31, %v470_v33  ;;  %v2471_v35 = vpop.f32.mrb[1].mxu0 }
  0xe7   : > { %v473_v36 = vpop.f32.mrb[2].mxu0 }
  0xe8   : > { %v509_v38 = vmax.f32 %v471_v34, 0.0  ;;  %v474_v39 = vadd.f32 %v3192_v31, %v473_v36  ;;  %v2472_v40 = vpop.f32.mrb[3].mxu0 }
  0xea   : > { %v510_v42 = vmax.f32 %v474_v39, 0.0  ;;  %v579_v43 = vmul.f32 %v532_v37, %v509_v38 }
  0xec   : > { %v2385_v44 = vpack.c.bf16 %v579_v43, %v579_v43  ;;  %v580_v45 = vmul.f32 %v537_v41, %v510_v42 }
  0xed   : > { %v478_v46 = vpop.f32.mrb[4].mxu0 }
  0xee   : > { %v637_v47 = vrot.slane %v2385_v44, 7  ;;  %v2386_v48 = vpack.c.bf16 %v580_v45, %v580_v45  ;;  %v479_v49 = vadd.f32 %v3192_v31, %v478_v46  ;;  %v2475_v50 = vpop.f32.mrb[5].mxu0  ;;  %v700_v46 = vld [vmem:[%s3642_s4] sm:$0xf] }
  0xef   : > { %v481_v52 = vpop.f32.mrb[6].mxu0 }
  0xf0   : > { %v638_v54 = vrot.slane %v637_v47, 4  ;;  %678 = vst.msk [vmem:[#allocation2 + $0x4] sm:$0xe] %vm677_vm9, %v637_v47  ;;  %v639_v55 = vrot.slane %v2386_v48, 7  ;;  %v511_v56 = vmax.f32 %v479_v49, 0.0  ;;  %v482_v57 = vadd.f32 %v3192_v31, %v481_v52  ;;  %v2476_v58 = vpop.f32.mrb[7].mxu0 }
  0xf2   : > { %v640_v59 = vsel %vm3199_vm10, %v638_v54, %v639_v55  ;;  %v512_v60 = vmax.f32 %v482_v57, 0.0  ;;  %v581_v61 = vmul.f32 %v542_v53, %v511_v56  ;;  %v641_v2 = vrot.slane %v639_v55, 4 }
  0xf3   : > { %679 = vst.msk [vmem:[#allocation2 + $0x8] sm:$0xf] %vm589_vm3, %v640_v59 }
  0xf4   : > { %v582_v62 = vmul.f32 %v547_v25, %v512_v60  ;;  %v2387_v63 = vpack.c.bf16 %v581_v61, %v581_v61  ;;  %v877_v60 = vsel %vm785_vm4, %v700_v46, 0 }
  0xf5   : > { %v486_v0 = vpop.f32.mrb[8].mxu0 }
  0xf6   : > { %v2388_v3 = vpack.c.bf16 %v582_v62, %v582_v62  ;;  %v642_v4 = vrot.slane %v2387_v63, 7  ;;  %v487_v5 = vadd.f32 %v3192_v31, %v486_v0  ;;  %v2479_v6 = vpop.f32.mrb[9].mxu0 }
  0xf7   : > { %v489_v8 = vpop.f32.mrb[10].mxu0  ;;  %v691_v9 = vld [vmem:[#allocation2 + $0x4] sm:$0xf] }
  0xf8   : > { %v645_v10 = vrot.slane %v2388_v3, 7  ;;  %v643_v11 = vsel %vm3199_vm10, %v641_v2, %v642_v4  ;;  %v644_v12 = vrot.slane %v642_v4, 4  ;;  %v513_v13 = vmax.f32 %v487_v5, 0.0  ;;  %v2480_v14 = vpop.f32.mrb[11].mxu0 }
  0xf9   : > { %680 = vst.msk [vmem:[#allocation2 + $0xc] sm:$0xf] %vm589_vm3, %v643_v11  ;;  %v490_v15 = vadd.f32 %v3192_v31, %v489_v8  ;;  %v3212_v16 = vcombine.low %v690_v7, %v691_v9 }
  0xfa   : > { %v646_v17 = vsel %vm3199_vm10, %v644_v12, %v645_v10  ;;  %v583_v18 = vmul.f32 %v552_v27, %v513_v13  ;;  %v647_v33 = vrot.slane %v645_v10, 4  ;;  %v2309_v27 = vcombine.low %v952_v22, %v691_v9 }
  0xfb   : > { %681 = vst.msk [vmem:[#allocation2 + $0x10] sm:$0xf] %vm589_vm3, %v646_v17  ;;  %v514_v19 = vmax.f32 %v490_v15, 0.0  ;;  %v733_v20 = vshll.u32 %v3212_v16, 16  ;;  %v731_v49 = vshrl.u32 %v3212_v16, 16 }
  0xfc   : > { %v2389_v21 = vpack.c.bf16 %v583_v18, %v583_v18  ;;  %v959_v53 = vrot.slane %v2309_v27, 1 }
  0xfd   : > { %v584_v23 = vmul.f32 %v3181_v26, %v514_v19  ;;  %v494_v25 = vpop.f32.mrb[12].mxu0  ;;  %v735_v39 = vrot.slane %v733_v20, 1 }
  0xfe   : > { %v648_v34 = vrot.slane %v2389_v21, 7  ;;  %v495_v35 = vadd.f32 %v3192_v31, %v494_v25  ;;  %v2483_v36 = vpop.f32.mrb[13].mxu0 }
  0xff   : > { %v2390_v37 = vpack.c.bf16 %v584_v23, %v584_v23  ;;  %v497_v38 = vpop.f32.mrb[14].mxu0  ;;  %v736_v57 = vor.u32 %v735_v39, %v731_v49 }
 0x100   : > { %v649_v40 = vsel %vm3199_vm10, %v647_v33, %v648_v34  ;;  %v650_v41 = vrot.slane %v648_v34, 4  ;;  %v515_v42 = vmax.f32 %v495_v35, 0.0  ;;  %v498_v43 = vadd.f32 %v3192_v31, %v497_v38  ;;  %v2484_v44 = vpop.f32.mrb[15].mxu0  ;;  %v3223_v26 = vld [vmem:[#allocation2 + $0x8] sm:$0xff]  }
 0x101   : > { %682 = vst.msk [vmem:[#allocation2 + $0x14] sm:$0xf] %vm589_vm3, %v649_v40  ;;  %v651_v45 = vrot.slane %v2390_v37, 7  ;;  %v738_v50 = vshll.u32 %v3223_v26, 16  ;;  %v960_v54 = vrot.slane %v3223_v26, 1  ;;  %v742_v14 = vshrl.u32 %v3223_v26, 16 }
 0x102   : > { %v585_v47 = vmul.f32 %v3183_v28, %v515_v42  ;;  %v516_v48 = vmax.f32 %v498_v43, 0.0 }
 0x103   : > { %v652_v52 = vsel %vm3199_vm10, %v650_v41, %v651_v45  ;;  %v740_v58 = vrot.slane %v738_v50, 1  ;;  %v653_v59 = vrot.slane %v651_v45, 4  ;;  %v3239_v61 = vsel %vm958_vm12, %v959_v53, %v960_v54  ;;  %v2338_v41 = vld [vmem:[%s3642_s4 + $0x14] sm:$0xf] }
 0x104   : > { %683 = vst.msk [vmem:[#allocation2 + $0x18] sm:$0xf] %vm589_vm3, %v652_v52  ;;  %v2391_v55 = vpack.c.bf16 %v585_v47, %v585_v47  ;;  %v586_v56 = vmul.f32 %v3185_v29, %v516_v48  ;;  %v1442_v51 = vsel %vm785_vm4, %v2338_v41, 0 }
 0x105   : > { %v502_v28 = vpop.f32.mrb[16].mxu0  ;;  %v741_v3 = vsel %vm729_vm11, %v736_v57, %v740_v58  ;;  %v744_v20 = vor.u32 %v742_v14, %v740_v58 }
 0x106   : > { %v654_v62 = vrot.slane %v2391_v55, 7  ;;  %v2392_v63 = vpack.c.bf16 %v586_v56, %v586_v56  ;;  %v503_v0 = vadd.f32 %v3192_v31, %v502_v28  ;;  %v2487_v2 = vpop.f32.mrb[17].mxu0  ;;  %2492 = vmatmul.mubr.msk.bf16.vlgmr.msra.gmra.mrb[20].mxu0 %vm769_vm5, %v741_v3 }
 0x107   : > { %v505_v4 = vpop.f32.mrb[18].mxu0  ;;  %2495 = vmatprep.mubr.msk.bf16.mxu0 %vm2963_vm0, %v2962_v1  ;;  %2512 = vmatpush3.bf16.msra.mxu0 %v877_v60  ;;  %v3305_v60 = vld [vmem:[#allocation2 + $0x8] sm:$0xf] }
 0x108   : > { %v655_v29 = vsel %vm3199_vm10, %v653_v59, %v654_v62  ;;  %v656_v5 = vrot.slane %v654_v62, 4  ;;  %v657_v6 = vrot.slane %v2392_v63, 7  ;;  %v517_v7 = vmax.f32 %v503_v0, 0.0  ;;  %v2488_v8 = vpop.f32.mrb[19].mxu0  ;;  %v3250_v10 = vld [vmem:[#allocation2 + $0x10] sm:$0xff]   ;;  %2533 = vmatprep.subr.bf16.mxu0 %v2962_v1 }
 0x109   : > { %684 = vst.msk [vmem:[#allocation2 + $0x1c] sm:$0xf] %vm589_vm3, %v655_v29  ;;  %v506_v9 = vadd.f32 %v3192_v31, %v505_v4  ;;  %v746_v15 = vshll.u32 %v3250_v10, 16  ;;  %v962_v31 = vrot.slane %v3250_v10, 1  ;;  %v750_v39 = vshrl.u32 %v3250_v10, 16 }
 0x10a   : > { %v658_v11 = vsel %vm3199_vm10, %v656_v5, %v657_v6  ;;  %v587_v12 = vmul.f32 %v3187_v30, %v517_v7  ;;  %v659_v22 = vrot.slane %v657_v6, 4  ;;  %v1216_v63 = vld [vmem:[#allocation2 + $0x4] sm:$0xe] }
 0x10b   : > { %685 = vst.msk [vmem:[#allocation2 + $0x20] sm:$0xf] %vm589_vm3, %v658_v11  ;;  %v518_v13 = vmax.f32 %v506_v9, 0.0  ;;  %v3259_v17 = vld [vmem:[#allocation2 + $0x14] sm:$0xff]   ;;  %v748_v21 = vrot.slane %v746_v15, 1  ;;  %v3264_v30 = vsel %vm958_vm12, %v960_v54, %v962_v31  ;;  %v2327_v4 = vcombine.low %v1216_v63, %v3305_v60 }
 0x10c   : > { %v2393_v18 = vpack.c.bf16 %v587_v12, %v587_v12  ;;  %v1276_v34 = vshrl.u32 %v3259_v17, 16  ;;  %v1279_v35 = vshll.u32 %v3259_v17, 16  ;;  %v3329_v15 = vld [vmem:[#allocation2 + $0xc] sm:$0xf]  ;;  %v2308_v63 = vld [vmem:[%s3642_s4 + $0x8] sm:$0xf] }
 0x10d   : > { %v588_v19 = vmul.f32 %v3194_v32, %v518_v13  ;;  %v749_v33 = vsel %vm729_vm11, %v744_v20, %v748_v21  ;;  %v752_v44 = vor.u32 %v750_v39, %v748_v21  ;;  %v1262_v20 = vshll.u32 %v2327_v4, 16  ;;  %v1841_v21 = vld [vmem:[#allocation2 + $0x8] sm:$0x8] }
 0x10e   : > { %v660_v23 = vrot.slane %v2393_v18, 7  ;;  %2496 = vmatmul.mubr.msk.bf16.gmra.mrb[24].mxu0 %vm769_vm5, %v749_v33  ;;  %v1278_v45 = vrot.slane %v1276_v34, 1  ;;  %v1281_v47 = vrot.slane %v1279_v35, 2 }
 0x10f   : > { %v2394_v25 = vpack.c.bf16 %v588_v19, %v588_v19  ;;  %2499 = vmatprep.mubr.msk.bf16.mxu0 %vm2963_vm0, %v2962_v1  ;;  %v1259_v19 = vshrl.u32 %v2327_v4, 16  ;;  %v1264_v39 = vrot.slane %v1262_v20, 2  ;;  %v1408_v4 = vld [vmem:[#allocation2 + $0x4] sm:$0xc] }
 0x110   : > { %v661_v36 = vsel %vm3199_vm10, %v659_v22, %v660_v23  ;;  %v662_v37 = vrot.slane %v660_v23, 4  ;;  %v3272_v32 = vld [vmem:[#allocation2 + $0x18] sm:$0xff]   ;;  %v3296_v56 = vor.u32 %v1281_v47, %v1278_v45  ;;  %v3337_v23 = vld [vmem:[#allocation2 + $0x10] sm:$0xff]  }
 0x111   : > { %686 = vst.msk [vmem:[#allocation2 + $0x24] sm:$0xf] %vm589_vm3, %v661_v36  ;;  %v663_v38 = vrot.slane %v2394_v25, 7  ;;  %v754_v27 = vshll.u32 %v3272_v32, 16  ;;  %v964_v50 = vrot.slane %v3272_v32, 1  ;;  %v758_v0 = vshrl.u32 %v3272_v32, 16 }
 0x112   : > { %v3279_v40 = vld [vmem:[#allocation2 + $0x1c] sm:$0xff]   ;;  %v2365_v25 = vcombine.low %v1841_v21, %v3329_v15  ;;  %v1849_v45 = vrot.slane %v3337_v23, 3  ;;  %v1569_v20 = vrot.slane %v3337_v23, 2 }
 0x113   : > { %v664_v42 = vsel %vm3199_vm10, %v662_v37, %v663_v38  ;;  %v665_v43 = vrot.slane %v663_v38, 4  ;;  %v756_v46 = vrot.slane %v754_v27, 1  ;;  %v1285_v48 = vshrl.u32 %v3279_v40, 16  ;;  %v3298_v58 = vld [vmem:[#allocation2 + $0x20] sm:$0xf]  ;;  %v3341_v34 = vld [vmem:[#allocation2 + $0x18] sm:$0xff]  }
 0x114   : > { %687 = vst.msk [vmem:[#allocation2 + $0x28] sm:$0xf] %vm589_vm3, %v664_v42  ;;  %v1288_v49 = vshll.u32 %v3279_v40, 16  ;;  %v3293_v55 = vsel %vm958_vm12, %v962_v31, %v964_v50  ;;  %v3334_v31 = vld [vmem:[#allocation2 + $0xc] sm:$0xff]   ;;  %v1261_v38 = vrot.slane %v1259_v19, 1 }
 0x115   : > { %689 = vst.msk [vmem:[#allocation2 + $0x2c] sm:$0x1] %vm688_vm13, %v665_v43  ;;  %v757_v52 = vsel %vm729_vm11, %v752_v44, %v756_v46  ;;  %v1287_v53 = vrot.slane %v1285_v48, 1  ;;  %v760_v5 = vor.u32 %v758_v0, %v756_v46  ;;  %v1267_v27 = vshrl.u32 %v3334_v31, 16  ;;  %v1527_v19 = vld [vmem:[#allocation2 + $0x8] sm:$0xc] }
 0x116   : > { %v1290_v54 = vrot.slane %v1288_v49, 2  ;;  %2500 = vmatmul.mubr.msk.bf16.gmra.mrb[28].mxu0 %vm769_vm5, %v757_v52  ;;  %v1270_v41 = vshll.u32 %v3334_v31, 16  ;;  %v1848_v44 = vrot.slane %v2365_v25, 3  ;;  %v1851_v48 = vrot.slane %v3341_v34, 3  ;;  %v2357_v21 = vld [vmem:[%s3642_s4 + $0x1c] sm:$0xf] }
 0x117   : > { %2503 = vmatprep.mubr.msk.bf16.mxu0 %vm2963_vm0, %v2962_v1  ;;  %v1269_v46 = vrot.slane %v1267_v27, 1  ;;  %v1756_v25 = vsel %vm785_vm4, %v2357_v21, 0  ;;  %vm1686_vm3 = vsmask.f32 5376 }
 0x118   : > { %v1291_v57 = vor.u32 %v1290_v54, %v1287_v53  ;;  %v701_v59 = vld [vmem:[#allocation2 + $0x24] sm:$0xf]  ;;  %v1272_v47 = vrot.slane %v1270_v41, 2  ;;  %v1265_v53 = vor.u32 %v1264_v39, %v1261_v38  ;;  %v2942_v39 = vld [vmem:[#allocation2 + $0x30] ss:$0 sps:$4 sm:$0x11]  }
 0x119   : > { %v3303_v28 = vcombine.low %v3298_v58, %v701_v59  ;;  %v3343_v35 = vld [vmem:[#allocation2 + $0x20] sm:$0xff]   ;;  %v1577_v27 = vrot.slane %v2942_v39, 2  ;;  %v2944_v41 = vld [vmem:[#allocation2 + $0xc] sm:$0xff]  }
 0x11a   : > { %v1292_v62 = vsel %vm1257_vm14, %v3296_v56, %v1291_v57  ;;  %v1853_v49 = vrot.slane %v3343_v35, 3  ;;  %v1273_v54 = vor.u32 %v1272_v47, %v1269_v46  ;;  %v1107_v47 = vrot.slane %v2944_v41, 1  ;;  %v2948_v21 = vld [vmem:[#allocation2 + $0x30] ss:$0 sps:$4 sm:$0x33]  }
 0x11b   : > { %2588 = vmatmul.mubr.msk.bf16.vlgmr.msra.gmra.mrb[0].mxu1 %vm769_vm5, %v1292_v62  ;;  %v762_v2 = vshll.u32 %v3303_v28, 16  ;;  %v3312_v3 = vld [vmem:[#allocation2 + $0x24] sm:$0xff]   ;;  %v966_v29 = vrot.slane %v3303_v28, 1  ;;  %v766_v36 = vshrl.u32 %v3303_v28, 16  ;;  %v1987_v39 = vld [vmem:[%s3644_s6] sm:$0x3] }
 0x11c   : > { %2600 = vmatpush3.bf16.msra.mxu1 %v1442_v51  ;;  %2591 = vmatprep.mubr.msk.bf16.mxu1 %vm2963_vm0, %v2962_v1  ;;  %v1294_v7 = vshrl.u32 %v3312_v3, 16  ;;  %v1297_v8 = vshll.u32 %v3312_v3, 16  ;;  %v3321_v9 = vld [vmem:[#allocation2 + $0x2c] ss:$0 sps:$4 sm:$0x11]   ;;  %v3364_v51 = vsel %vm1847_vm15, %v1849_v45, %v1851_v48  ;;  %v3379_v0 = vsel %vm1257_vm14, %v1265_v53, %v1273_v54 }
 0x11d   : > { %v764_v6 = vrot.slane %v762_v2, 1  ;;  %2621 = vmatprep.subr.bf16.mxu1 %v2962_v1  ;;  %v3326_v11 = vsel %vm958_vm12, %v964_v50, %v966_v29  ;;  %v1303_v22 = vshll.u32 %v3321_v9, 16  ;;  %v3347_v37 = vld [vmem:[#allocation2 + $0x28] sm:$0xff]   ;;  %v3358_v50 = vsel %vm1847_vm15, %v1848_v44, %v1849_v45 }
 0x11e   : > { %v1296_v13 = vrot.slane %v1294_v7, 1  ;;  %v1299_v14 = vrot.slane %v1297_v8, 2  ;;  %v1855_v52 = vrot.slane %v3347_v37, 3  ;;  %v3383_v2 = vsel %vm1257_vm14, %v1273_v54, %v3296_v56  ;;  %v2345_v8 = vld [vmem:[%s3642_s4 + $0x18] sm:$0xf] }
 0x11f   : > { %v765_v12 = vsel %vm729_vm11, %v760_v5, %v764_v6  ;;  %v768_v42 = vor.u32 %v766_v36, %v764_v6  ;;  %v1305_v43 = vrot.slane %v1303_v22, 2  ;;  %v2339_v5 = vcombine.low %v1408_v4, %v3305_v60 }
 0x120   : > { %2504 = vmatmul.mubr.msk.bf16.gmra.mrb[32].mxu0 %vm769_vm5, %v765_v12  ;;  %v1300_v18 = vor.u32 %v1299_v14, %v1296_v13  ;;  %v3372_v59 = vsel %vm1847_vm15, %v1853_v49, %v1855_v52  ;;  %v984_v6 = vsel %vm785_vm4, %v2308_v63, 0  ;;  %v1416_v7 = vrot.slane %v3334_v31, 2  ;;  %v2945_v63 = vld [vmem:[#allocation2 + $0x14] sm:$0xff]  }
 0x121   : > { %2507 = vmatprep.mubr.msk.bf16.mxu0 %vm2963_vm0, %v2962_v1  ;;  %v1415_v56 = vrot.slane %v2339_v5, 2  ;;  %v1595_v12 = vsel %vm785_vm4, %v2345_v8, 0  ;;  %v1420_v14 = vrot.slane %v3279_v40, 2  ;;  %v699_v40 = vld [vmem:[#allocation2 + $0x24] sm:$0x7]  ;;  %v1424_v31 = vrot.slane %v3321_v9, 2 }
 0x122   : > { %v1301_v33 = vsel %vm1257_vm14, %v1291_v57, %v1300_v18  ;;  %v3367_v57 = vsel %vm1847_vm15, %v1851_v48, %v1853_v49  ;;  %v1306_v62 = vsel %vm1257_vm14, %v1300_v18, %v1305_v43  ;;  %v2302_v18 = vcombine.low %v3298_v58, %v699_v40 }
 0x123   : > { %2592 = vmatmul.mubr.msk.bf16.gmra.mrb[4].mxu1 %vm769_vm5, %v1301_v33  ;;  %v1417_v60 = vsel %vm1414_vm2, %v1415_v56, %v1416_v7  ;;  %v2346_v58 = vcombine.low %v1527_v19, %v3329_v15  ;;  %v1573_v36 = vrot.slane %v3343_v35, 2  ;;  %v1575_v38 = vrot.slane %v3347_v37, 2 }
 0x124   : > { %2595 = vmatprep.mubr.msk.bf16.mxu1 %vm2963_vm0, %v2962_v1  ;;  %v1699_v43 = vshll.u32 %v3337_v23, 16  ;;  %v1705_v4 = vshrl.u32 %v3341_v34, 16  ;;  %v1708_v5 = vshll.u32 %v3341_v34, 16  ;;  %v1109_v56 = vrot.slane %v2945_v63, 1 }
 0x125   : > { %v1568_v22 = vrot.slane %v2346_v58, 2  ;;  %v1688_v44 = vshrl.u32 %v2346_v58, 16  ;;  %v1691_v45 = vshll.u32 %v2346_v58, 16  ;;  %v1578_v46 = vsel %vm1414_vm2, %v1575_v38, %v1577_v27 }
 0x126   : > { %v1701_v49 = vrot.slane %v1699_v43, 3  ;;  %v2076_v27 = vsel %vm432_vm1, %v1987_v39, 0  ;;  %vm2059_vm1 = vcmask 31744  }
 0x127   : > { %v1570_v15 = vsel %vm1414_vm2, %v1568_v22, %v1569_v20  ;;  %v1690_v28 = vrot.slane %v1688_v44, 2  ;;  %v2951_v44 = vld [vmem:[%s3078_s18 + $0x10] sm:$0xff]  }
 0x128   : > { %2508 = vmatmul.mubr.msk.bf16.gmra.mrb[36].mxu0 %vm769_vm5, %v768_v42  ;;  %v1696_v42 = vshrl.u32 %v3337_v23, 16  ;;  %v1693_v23 = vrot.slane %v1691_v45, 3 }
 0x129   : > { %2513 = vmatprep.mubr.msk.bf16.mxu0 %vm2963_vm0, %v2962_v1 }
 0x12a   : > { %v1698_v48 = vrot.slane %v1696_v42, 2 }
 0x12b   : > { %2596 = vmatmul.mubr.msk.bf16.gmra.mrb[8].mxu1 %vm769_vm5, %v1306_v62  ;;  %v2364_v62 = vld [vmem:[%s3642_s4 + $0x20] sm:$0xf] }
 0x12c   : > { %2601 = vmatprep.mubr.msk.bf16.mxu1 %vm2963_vm0, %v2962_v1  ;;  %v1702_v54 = vor.u32 %v1701_v49, %v1698_v48  ;;  %v2952_v48 = vld [vmem:[%s3078_s18 + $0x18] sm:$0xff]  }
 0x12d   : > { %v2048_v63 = vshrl.u32 %v2952_v48, 16 }
 0x130   : > { %2514 = vmatmul.mubr.msk.bf16.vlgmr.msra.gmra.mrb[20].mxu0 %vm769_vm5, %v3212_v16  ;;  %v1418_v16 = vrot.slane %v3259_v17, 2  ;;  %v1422_v17 = vrot.slane %v3312_v3, 2  ;;  %v2315_v3 = vld [vmem:[%s3642_s4 + $0xc] sm:$0xf] }
 0x131   : > { %2517 = vmatprep.mubr.msk.bf16.mxu0 %vm2963_vm0, %v2962_v1  ;;  %2534 = vmatpush3.bf16.msra.mxu0 %v984_v6  ;;  %v1131_v9 = vsel %vm785_vm4, %v2315_v3, 0  ;;  %v1694_v6 = vor.u32 %v1693_v23, %v1690_v28  ;;  %v1726_v3 = vshll.u32 %v3347_v37, 16  ;;  %v2044_v28 = vshll.u32 %v2952_v48, 16 }
 0x132   : > { %2555 = vmatprep.subr.bf16.mxu0 %v2962_v1  ;;  %v1419_v13 = vsel %vm1414_vm2, %v1416_v7, %v1418_v16  ;;  %v1875_v7 = vsel %vm785_vm4, %v2364_v62, 0 }
 0x133   : > { %2602 = vmatmul.mubr.msk.bf16.vlgmr.msra.gmra.mrb[12].mxu1 %vm769_vm5, %v1417_v60  ;;  %v1703_v8 = vsel %vm1686_vm3, %v1694_v6, %v1702_v54  ;;  %v1710_v60 = vrot.slane %v1708_v5, 3 }
 0x134   : > { %2622 = vmatpush3.bf16.msra.mxu1 %v1595_v12  ;;  %2605 = vmatprep.mubr.msk.bf16.mxu1 %vm2963_vm0, %v2962_v1  ;;  %v1707_v12 = vrot.slane %v1705_v4, 2 }
 0x135   : > { %2643 = vmatprep.subr.bf16.mxu1 %v2962_v1 }
 0x138   : > { %2518 = vmatmul.mubr.msk.bf16.gmra.mrb[24].mxu0 %vm769_vm5, %v3223_v26  ;;  %v1421_v26 = vsel %vm1414_vm2, %v1418_v16, %v1420_v14  ;;  %v1711_v16 = vor.u32 %v1710_v60, %v1707_v12 }
 0x139   : > { %2521 = vmatprep.mubr.msk.bf16.mxu0 %vm2963_vm0, %v2962_v1 }
 0x13b   : > { %2606 = vmatmul.mubr.msk.bf16.gmra.mrb[16].mxu1 %vm769_vm5, %v1419_v13  ;;  %v2946_v13 = vld [vmem:[#allocation2 + $0x1c] sm:$0xff]  }
 0x13c   : > { %2609 = vmatprep.mubr.msk.bf16.mxu1 %vm2963_vm0, %v2962_v1 }
 0x140   : > { %2522 = vmatmul.mubr.msk.bf16.gmra.mrb[28].mxu0 %vm769_vm5, %v3250_v10  ;;  %v1423_v10 = vsel %vm1414_vm2, %v1420_v14, %v1422_v17  ;;  %v1717_v14 = vshll.u32 %v3343_v35, 16 }
 0x141   : > { %2525 = vmatprep.mubr.msk.bf16.mxu0 %vm2963_vm0, %v2962_v1 }
 0x142   : > { %v1719_v40 = vrot.slane %v1717_v14, 3 }
 0x143   : > { %2610 = vmatmul.mubr.msk.bf16.gmra.mrb[0].mxu1 %vm769_vm5, %v1421_v26  ;;  %v1712_v26 = vsel %vm1686_vm3, %v1702_v54, %v1711_v16  ;;  %v2953_v54 = vld [vmem:[%s3078_s18 + $0x20] sm:$0xff]  }
 0x144   : > { %2613 = vmatprep.mubr.msk.bf16.mxu1 %vm2963_vm0, %v2962_v1  ;;  %v2052_v4 = vshll.u32 %v2953_v54, 16 }
 0x146   : > { %v2054_v6 = vrot.slane %v2052_v4, 1 }
 0x148   : > { %2526 = vmatmul.mubr.msk.bf16.gmra.mrb[32].mxu0 %vm769_vm5, %v3272_v32  ;;  %v1425_v32 = vsel %vm1414_vm2, %v1422_v17, %v1424_v31  ;;  %v1111_v17 = vrot.slane %v2946_v13, 1 }
 0x149   : > { %2529 = vmatprep.mubr.msk.bf16.mxu0 %vm2963_vm0, %v2962_v1 }
 0x14b   : > { %2614 = vmatmul.mubr.msk.bf16.gmra.mrb[4].mxu1 %vm769_vm5, %v1423_v10 }
 0x14c   : > { %2617 = vmatprep.mubr.msk.bf16.mxu1 %vm2963_vm0, %v2962_v1 }
 0x150   : > { %2530 = vmatmul.mubr.msk.bf16.gmra.mrb[36].mxu0 %vm769_vm5, %v2302_v18  ;;  %v1112_v18 = vsel %vm958_vm12, %v1109_v56, %v1111_v17 }
 0x151   : > { %2535 = vmatprep.mubr.msk.bf16.mxu0 %vm2963_vm0, %v2962_v1 }
 0x153   : > { %2618 = vmatmul.mubr.msk.bf16.gmra.mrb[8].mxu1 %vm769_vm5, %v1425_v32  ;;  %v2947_v32 = vld [vmem:[#allocation2 + $0x24] sm:$0xff]  }
 0x154   : > { %2623 = vmatprep.mubr.msk.bf16.mxu1 %vm2963_vm0, %v2962_v1  ;;  %v1113_v58 = vrot.slane %v2947_v32, 1 }
 0x156   : > { %v1114_v22 = vsel %vm958_vm12, %v1111_v17, %v1113_v58 }
 0x158   : > { %2536 = vmatmul.mubr.msk.bf16.vlgmr.msra.gmra.mrb[20].mxu0 %vm769_vm5, %v3239_v61  ;;  %v1571_v61 = vrot.slane %v3341_v34, 2  ;;  %v1110_v34 = vsel %vm958_vm12, %v1107_v47, %v1109_v56 }
 0x159   : > { %2539 = vmatprep.mubr.msk.bf16.mxu0 %vm2963_vm0, %v2962_v1  ;;  %2556 = vmatpush3.bf16.msra.mxu0 %v1131_v9 }
 0x15a   : > { %2577 = vmatprep.subr.bf16.mxu0 %v2962_v1  ;;  %v1572_v33 = vsel %vm1414_vm2, %v1569_v20, %v1571_v61  ;;  %v1728_v20 = vrot.slane %v1726_v3, 3 }
 0x15b   : > { %2624 = vmatmul.mubr.msk.bf16.vlgmr.msra.gmra.mrb[12].mxu1 %vm769_vm5, %v1570_v15  ;;  %v1732_v15 = vshrl.u32 %v2948_v21, 16 }
 0x15c   : > { %2644 = vmatpush3.bf16.msra.mxu1 %v1756_v25  ;;  %2627 = vmatprep.mubr.msk.bf16.mxu1 %vm2963_vm0, %v2962_v1 }
 0x15d   : > { %2665 = vmatprep.subr.bf16.mxu1 %v2962_v1 }
 0x160   : > { %2540 = vmatmul.mubr.msk.bf16.gmra.mrb[24].mxu0 %vm769_vm5, %v3264_v30  ;;  %v1574_v30 = vsel %vm1414_vm2, %v1571_v61, %v1573_v36  ;;  %v1735_v61 = vshll.u32 %v2948_v21, 16 }
 0x161   : > { %2543 = vmatprep.mubr.msk.bf16.mxu0 %vm2963_vm0, %v2962_v1 }
 0x163   : > { %2628 = vmatmul.mubr.msk.bf16.gmra.mrb[16].mxu1 %vm769_vm5, %v1572_v33 }
 0x164   : > { %2631 = vmatprep.mubr.msk.bf16.mxu1 %vm2963_vm0, %v2962_v1 }
 0x168   : > { %2544 = vmatmul.mubr.msk.bf16.gmra.mrb[28].mxu0 %vm769_vm5, %v3293_v55  ;;  %v1576_v55 = vsel %vm1414_vm2, %v1573_v36, %v1575_v38  ;;  %v1734_v36 = vrot.slane %v1732_v15, 2 }
 0x169   : > { %2547 = vmatprep.mubr.msk.bf16.mxu0 %vm2963_vm0, %v2962_v1 }
 0x16b   : > { %2632 = vmatmul.mubr.msk.bf16.gmra.mrb[0].mxu1 %vm769_vm5, %v1574_v30  ;;  %v1737_v30 = vrot.slane %v1735_v61, 3 }
 0x16c   : > { %2635 = vmatprep.mubr.msk.bf16.mxu1 %vm2963_vm0, %v2962_v1 }
 0x16d   : > { %v1738_v38 = vor.u32 %v1737_v30, %v1734_v36 }
 0x170   : > { %2548 = vmatmul.mubr.msk.bf16.gmra.mrb[32].mxu0 %vm769_vm5, %v3326_v11  ;;  %v2943_v11 = vld [vmem:[#allocation2 + $0x4] sm:$0xfe]  }
 0x171   : > { %2551 = vmatprep.mubr.msk.bf16.mxu0 %vm2963_vm0, %v2962_v1  ;;  %v1106_v53 = vrot.slane %v2943_v11, 1 }
 0x173   : > { %2636 = vmatmul.mubr.msk.bf16.gmra.mrb[4].mxu1 %vm769_vm5, %v1576_v55 }
 0x174   : > { %2639 = vmatprep.mubr.msk.bf16.mxu1 %vm2963_vm0, %v2962_v1 }
 0x178   : > { %2552 = vmatmul.mubr.msk.bf16.gmra.mrb[36].mxu0 %vm769_vm5, %v966_v29  ;;  %v1108_v29 = vsel %vm958_vm12, %v1106_v53, %v1107_v47  ;;  %v2036_v47 = vshll.u32 %v2951_v44, 16  ;;  %v2040_v53 = vshrl.u32 %v2951_v44, 16 }
 0x179   : > { %2557 = vmatprep.mubr.msk.bf16.mxu0 %vm2963_vm0, %v2962_v1 }
 0x17b   : > { %2640 = vmatmul.mubr.msk.bf16.gmra.mrb[8].mxu1 %vm769_vm5, %v1578_v46 }
 0x17c   : > { %2645 = vmatprep.mubr.msk.bf16.mxu1 %vm2963_vm0, %v2962_v1 }
 0x180   : > { %2558 = vmatmul.mubr.msk.bf16.vlgmr.msra.gmra.mrb[20].mxu0 %vm769_vm5, %v1108_v29  ;;  %v2046_v29 = vrot.slane %v2044_v28, 1 }
 0x181   : > { %2561 = vmatprep.mubr.msk.bf16.mxu0 %vm2963_vm0, %v2962_v1  ;;  %2578 = vmatpush3.bf16.msra.mxu0 %v3177_v24  ;;  %v1714_v24 = vshrl.u32 %v3343_v35, 16  ;;  %v1723_v35 = vshrl.u32 %v3347_v37, 16 }
 0x182   : > { %v2050_v5 = vor.u32 %v2048_v63, %v2046_v29 }
 0x183   : > { %2646 = vmatmul.mubr.msk.bf16.vlgmr.msra.gmra.mrb[12].mxu1 %vm769_vm5, %v1703_v8  ;;  %v1716_v10 = vrot.slane %v1714_v24, 2  ;;  %v1725_v9 = vrot.slane %v1723_v35, 2  ;;  %v2056_v8 = vshrl.u32 %v2953_v54, 16 }
 0x184   : > { %2666 = vmatpush3.bf16.msra.mxu1 %v1875_v7  ;;  %2649 = vmatprep.mubr.msk.bf16.mxu1 %vm2963_vm0, %v2962_v1  ;;  %v2055_v7 = vsel %vm729_vm11, %v2050_v5, %v2054_v6 }
 0x185   : > { %2687 = vmatprep.subr.bf16.mxu1 %v2962_v1  ;;  %v1720_v31 = vor.u32 %v1719_v40, %v1716_v10  ;;  %v1729_v25 = vor.u32 %v1728_v20, %v1725_v9  ;;  %v2058_v56 = vor.u32 %v2056_v8, %v2054_v6  ;;  %v2371_v20 = vld [vmem:[%s3643_s5] ss:$0 sm:$0xff] }
 0x187   : > { %v1721_v19 = vsel %vm1686_vm3, %v1711_v16, %v1720_v31  ;;  %v1730_v33 = vsel %vm1686_vm3, %v1720_v31, %v1729_v25  ;;  %v1739_v55 = vsel %vm1686_vm3, %v1729_v25, %v1738_v38  ;;  %v2372_v25 = vld [vmem:[%s3645_s7] ss:$0 sm:$0xff] }
 0x188   : > { %2562 = vmatmul.mubr.msk.bf16.gmra.mrb[24].mxu0 %vm769_vm5, %v1110_v34 }
 0x189   : > { %2565 = vmatprep.mubr.msk.bf16.mxu0 %vm2963_vm0, %v2962_v1 }
 0x18b   : > { %2650 = vmatmul.mubr.msk.bf16.gmra.mrb[16].mxu1 %vm769_vm5, %v1712_v26 }
 0x18c   : > { %2653 = vmatprep.mubr.msk.bf16.mxu1 %vm2963_vm0, %v2962_v1 }
 0x190   : > { %2566 = vmatmul.mubr.msk.bf16.gmra.mrb[28].mxu0 %vm769_vm5, %v1112_v18 }
 0x191   : > { %2569 = vmatprep.mubr.msk.bf16.mxu0 %vm2963_vm0, %v2962_v1 }
 0x193   : > { %2654 = vmatmul.mubr.msk.bf16.gmra.mrb[0].mxu1 %vm769_vm5, %v1721_v19 }
 0x194   : > { %2657 = vmatprep.mubr.msk.bf16.mxu1 %vm2963_vm0, %v2962_v1 }
 0x198   : > { %2570 = vmatmul.mubr.msk.bf16.gmra.mrb[32].mxu0 %vm769_vm5, %v1114_v22 }
 0x199   : > { %2573 = vmatprep.mubr.msk.bf16.mxu0 %vm2963_vm0, %v2962_v1 }
 0x19b   : > { %2658 = vmatmul.mubr.msk.bf16.gmra.mrb[4].mxu1 %vm769_vm5, %v1730_v33 }
 0x19c   : > { %2661 = vmatprep.mubr.msk.bf16.mxu1 %vm2963_vm0, %v2962_v1 }
 0x1a0   : > { %2574 = vmatmul.mubr.msk.bf16.gmra.mrb[36].mxu0 %vm769_vm5, %v1113_v58 }
 0x1a1   : > { %2579 = vmatprep.mubr.msk.bf16.mxu0 %vm2963_vm0, %v2962_v1 }
 0x1a3   : > { %2662 = vmatmul.mubr.msk.bf16.gmra.mrb[8].mxu1 %vm769_vm5, %v1739_v55 }
 0x1a4   : > { %2667 = vmatprep.mubr.msk.bf16.mxu1 %vm2963_vm0, %v2962_v1 }
 0x1a8   : > { %2580 = vmatmul.mubr.msk.bf16.vlgmr.msra.gmra.mrb[20].mxu0 %vm769_vm5, %v3379_v0  ;;  %v2950_v0 = vld [vmem:[%s3078_s18 + $0x8] sm:$0xff]  }
 0x1a9   : > { %2583 = vmatprep.mubr.msk.bf16.mxu0 %vm2963_vm0, %v2962_v1  ;;  %v2028_v43 = vshll.u32 %v2950_v0, 16  ;;  %v2032_v46 = vshrl.u32 %v2950_v0, 16 }
 0x1ab   : > { %2668 = vmatmul.mubr.msk.bf16.vlgmr.msra.gmra.mrb[12].mxu1 %vm769_vm5, %v3358_v50  ;;  %v2949_v50 = vld [vmem:[%s3078_s18] sm:$0xff]   ;;  %v2030_v11 = vrot.slane %v2028_v43, 1 }
 0x1ac   : > { %2688 = vmatpush3.bf16.msra.mxu1 %v2076_v27  ;;  %2671 = vmatprep.mubr.msk.bf16.mxu1 %vm2963_vm0, %v2962_v1  ;;  %v2021_v41 = vshrl.u32 %v2949_v50, 16 }
 0x1ad   : > { %v2034_v37 = vor.u32 %v2032_v46, %v2030_v11 }
 0x1b0   : > { %2584 = vmatmul.mubr.msk.bf16.gmra.mrb[24].mxu0 %vm769_vm5, %v3383_v2  ;;  %v2023_v2 = vshll.u32 %v2949_v50, 16 }
 0x1b2   : > { %v2025_v42 = vrot.slane %v2023_v2, 1 }
 0x1b3   : > { %2672 = vmatmul.mubr.msk.bf16.gmra.mrb[16].mxu1 %vm769_vm5, %v3364_v51  ;;  %v1857_v51 = vrot.slane %v2948_v21, 3 }
 0x1b4   : > { %2675 = vmatprep.mubr.msk.bf16.mxu1 %vm2963_vm0, %v2962_v1 }
 0x1bb   : > { %2676 = vmatmul.mubr.msk.bf16.gmra.mrb[0].mxu1 %vm769_vm5, %v3367_v57  ;;  %v1858_v57 = vsel %vm1847_vm15, %v1855_v52, %v1857_v51  ;;  %v2038_v52 = vrot.slane %v2036_v47, 1 }
 0x1bc   : > { %2679 = vmatprep.mubr.msk.bf16.mxu1 %vm2963_vm0, %v2962_v1 }
 0x1bd   : > { %v2039_v49 = vsel %vm729_vm11, %v2034_v37, %v2038_v52  ;;  %v2042_v23 = vor.u32 %v2040_v53, %v2038_v52 }
 0x1bf   : > { %v2047_v62 = vsel %vm729_vm11, %v2042_v23, %v2046_v29 }
 0x1c3   : > { %2680 = vmatmul.mubr.msk.bf16.gmra.mrb[4].mxu1 %vm769_vm5, %v3372_v59  ;;  %v2026_v59 = vor.u32 %v2025_v42, %v2021_v41 }
 0x1c4   : > { %2683 = vmatprep.mubr.msk.bf16.mxu1 %vm2963_vm0, %v2962_v1 }
 0x1c5   : > { %v2031_v45 = vsel %vm729_vm11, %v2026_v59, %v2030_v11 }
 0x1cb   : > { %2684 = vmatmul.mubr.msk.bf16.gmra.mrb[8].mxu1 %vm769_vm5, %v1858_v57 }
 0x1cc   : > { %2689 = vmatprep.mubr.msk.bf16.mxu1 %vm2963_vm0, %v2962_v1 }
 0x1d3   : > { %2690 = vmatmul.mubr.msk.bf16.vlgmr.msra.gmra.mrb[12].mxu1 %vm2059_vm1, %v2031_v45 }
 0x1d4   : > { %2693 = vmatprep.mubr.msk.bf16.mxu1 %vm2963_vm0, %v2962_v1 }
 0x1db   : > { %2694 = vmatmul.mubr.msk.bf16.gmra.mrb[16].mxu1 %vm2059_vm1, %v2039_v49 }
 0x1dc   : > { %2697 = vmatprep.mubr.msk.bf16.mxu1 %vm2963_vm0, %v2962_v1 }
 0x1e3   : > { %2698 = vmatmul.mubr.msk.bf16.gmra.mrb[0].mxu1 %vm2059_vm1, %v2047_v62 }
 0x1e4   : > { %2701 = vmatprep.mubr.msk.bf16.mxu1 %vm2963_vm0, %v2962_v1 }
 0x1eb   : > { %2702 = vmatmul.mubr.msk.bf16.gmra.mrb[4].mxu1 %vm2059_vm1, %v2055_v7 }
 0x1ec   : > { %2705 = vmatprep.mubr.msk.bf16.mxu1 %vm2963_vm0, %v2962_v1  ;;  %vm2190_vm0 = vcmask 62464  }
 0x1f3   : > { %2706 = vmatmul.mubr.msk.bf16.gmra.mrb[8].mxu1 %vm2059_vm1, %v2058_v56 }
 0x263   : > { %v1183_v12 = vpop.f32.mrb[28].mxu0 }
 0x264   : > { %v2567_v60 = vpop.f32.mrb[29].mxu0  ;;  %v2723_v11 = vadd.f32 %v2371_v20, %v1183_v12 }
 0x265   : > { %v1186_v34 = vpop.f32.mrb[30].mxu0 }
 0x266   : > { %v2568_v16 = vpop.f32.mrb[31].mxu0  ;;  %v2726_v47 = vadd.f32 %v2371_v20, %v1186_v34  ;;  %v2724_v52 = vadd.f32 %v2723_v11, %v2372_v25 }
 0x268   : > { %v2727_v28 = vadd.f32 %v2726_v47, %v2372_v25 }
 0x26b   : > { %v1191_v13 = vpop.f32.mrb[32].mxu0 }
 0x26c   : > { %v2571_v24 = vpop.f32.mrb[33].mxu0  ;;  %v2729_v29 = vadd.f32 %v2371_v20, %v1191_v13 }
 0x26d   : > { %v1194_v14 = vpop.f32.mrb[34].mxu0 }
 0x26e   : > { %v2572_v26 = vpop.f32.mrb[35].mxu0  ;;  %v2732_v4 = vadd.f32 %v2371_v20, %v1194_v14  ;;  %v2730_v6 = vadd.f32 %v2729_v29, %v2372_v25 }
 0x270   : > { %v2733_v12 = vadd.f32 %v2732_v4, %v2372_v25 }
 0x273   : > { %v3604_v17 = vpop.f32.mrb[36].mxu0 }
 0x274   : > { %v2575_v10 = vpop.f32.mrb[37].mxu0  ;;  %v2735_v34 = vadd.f32 %v2371_v20, %v3604_v17 }
 0x275   : > { %v3606_v40 = vpop.f32.mrb[38].mxu0 }
 0x276   : > { %v2576_v18 = vpop.f32.mrb[39].mxu0  ;;  %v2738_v14 = vadd.f32 %v2371_v20, %v3606_v40  ;;  %v2736_v10 = vadd.f32 %v2735_v34, %v2372_v25 }
 0x27b   : > { %v1359_v31 = vpop.f32.mrb[20].mxu0 }
 0x27c   : > { %v2581_v32 = vpop.f32.mrb[21].mxu0  ;;  %v2711_v21 = vadd.f32 %v2371_v20, %v1359_v31 }
 0x27d   : > { %v1362_v1 = vpop.f32.mrb[22].mxu0 }
 0x27e   : > { %v2582_v35 = vpop.f32.mrb[23].mxu0  ;;  %v2714_v22 = vadd.f32 %v2371_v20, %v1362_v1  ;;  %v2712_v15 = vadd.f32 %v2711_v21, %v2372_v25  ;;  %v2739_v1 = vadd.f32 %v2738_v14, %v2372_v25 }
 0x280   : > { %v2715_v30 = vadd.f32 %v2714_v22, %v2372_v25 }
 0x283   : > { %v1367_v3 = vpop.f32.mrb[24].mxu0 }
 0x284   : > { %v2585_v19 = vpop.f32.mrb[25].mxu0  ;;  %v2717_v55 = vadd.f32 %v2371_v20, %v1367_v3 }
 0x285   : > { %v1370_v58 = vpop.f32.mrb[26].mxu0 }
 0x286   : > { %v2586_v9 = vpop.f32.mrb[27].mxu0  ;;  %v2720_v0 = vadd.f32 %v2371_v20, %v1370_v58  ;;  %v2718_v51 = vadd.f32 %v2717_v55, %v2372_v25 }
 0x288   : > { %v2721_v57 = vadd.f32 %v2720_v0, %v2372_v25 }
 0x2a6   : > { %v2112_v61 = vpop.f32.mrb[12].mxu1 }
 0x2a7   : > { %v2713_v33 = vadd.f32 %v2712_v15, %v2112_v61  ;;  %v2691_v36 = vpop.f32.mrb[13].mxu1 }
 0x2a8   : > { %v2115_v38 = vpop.f32.mrb[14].mxu1 }
 0x2a9   : > { %v2171_v39 = vmax.f32 %v2713_v33, 0.0  ;;  %v2716_v27 = vadd.f32 %v2715_v30, %v2115_v38  ;;  %v2692_v50 = vpop.f32.mrb[15].mxu1 }
 0x2ab   : > { %2181 = vst.msk [vmem:[%s3139_s11 + $0x1] sm:$0xff] %vm769_vm5, %v2171_v39  ;;  %v2172_v2 = vmax.f32 %v2716_v27, 0.0 }
 0x2ad   : > { %2182 = vst.msk [vmem:[%s3139_s11 + $0x9] sm:$0xff] %vm769_vm5, %v2172_v2 }
 0x2ae   : > { %v2120_v41 = vpop.f32.mrb[16].mxu1 }
 0x2af   : > { %v2719_v42 = vadd.f32 %v2718_v51, %v2120_v41  ;;  %v2695_v43 = vpop.f32.mrb[17].mxu1 }
 0x2b0   : > { %v2123_v59 = vpop.f32.mrb[18].mxu1 }
 0x2b1   : > { %v2173_v44 = vmax.f32 %v2719_v42, 0.0  ;;  %v2722_v45 = vadd.f32 %v2721_v57, %v2123_v59  ;;  %v2696_v46 = vpop.f32.mrb[19].mxu1 }
 0x2b3   : > { %2183 = vst.msk [vmem:[%s3139_s11 + $0x11] sm:$0xff] %vm769_vm5, %v2173_v44  ;;  %v2174_v37 = vmax.f32 %v2722_v45, 0.0 }
 0x2b5   : > { %2184 = vst.msk [vmem:[%s3139_s11 + $0x19] sm:$0xff] %vm769_vm5, %v2174_v37 }
 0x2b6   : > { %v2128_v48 = vpop.f32.mrb[0].mxu1 }
 0x2b7   : > { %v2725_v49 = vadd.f32 %v2724_v52, %v2128_v48  ;;  %v2699_v53 = vpop.f32.mrb[1].mxu1 }
 0x2b8   : > { %v2131_v23 = vpop.f32.mrb[2].mxu1 }
 0x2b9   : > { %v2175_v54 = vmax.f32 %v2725_v49, 0.0  ;;  %v2728_v62 = vadd.f32 %v2727_v28, %v2131_v23  ;;  %v2700_v63 = vpop.f32.mrb[3].mxu1 }
 0x2bb   : > { %2185 = vst.msk [vmem:[%s3139_s11 + $0x21] sm:$0xff] %vm769_vm5, %v2175_v54  ;;  %v2176_v5 = vmax.f32 %v2728_v62, 0.0 }
 0x2bd   : > { %2186 = vst.msk [vmem:[%s3139_s11 + $0x29] sm:$0xff] %vm769_vm5, %v2176_v5 }
 0x2be   : > { %v2136_v7 = vpop.f32.mrb[4].mxu1 }
 0x2bf   : > { %v2731_v8 = vadd.f32 %v2730_v6, %v2136_v7  ;;  %v2703_v56 = vpop.f32.mrb[5].mxu1 }
 0x2c0   : > { %v2139_v60 = vpop.f32.mrb[6].mxu1 }
 0x2c1   : > { %v2177_v16 = vmax.f32 %v2731_v8, 0.0  ;;  %v2734_v13 = vadd.f32 %v2733_v12, %v2139_v60  ;;  %v2704_v24 = vpop.f32.mrb[7].mxu1 }
 0x2c3   : > { %2187 = vst.msk [vmem:[%s3139_s11 + $0x31] sm:$0xff] %vm769_vm5, %v2177_v16  ;;  %v2178_v26 = vmax.f32 %v2734_v13, 0.0 }
 0x2c5   : > { %2188 = vst.msk [vmem:[%s3139_s11 + $0x39] sm:$0xff] %vm769_vm5, %v2178_v26 }
 0x2c6   : > { %v2144_v18 = vpop.f32.mrb[8].mxu1 }
 0x2c7   : > { %v2737_v31 = vadd.f32 %v2736_v10, %v2144_v18  ;;  %v2707_v32 = vpop.f32.mrb[9].mxu1 }
 0x2c8   : > { %v2147_v35 = vpop.f32.mrb[10].mxu1 }
 0x2c9   : > { %v2179_v3 = vmax.f32 %v2737_v31, 0.0  ;;  %v2740_v17 = vadd.f32 %v2739_v1, %v2147_v35  ;;  %v2708_v19 = vpop.f32.mrb[11].mxu1 }
 0x2cb   : > { %2189 = vst.msk [vmem:[%s3139_s11 + $0x41] sm:$0xff] %vm769_vm5, %v2179_v3  ;;  %v2180_v58 = vmax.f32 %v2740_v17, 0.0 }
 0x2cd   : > { %2191 = vst.msk [vmem:[%s3139_s11 + $0x49] sm:$0x3f] %vm2190_vm0, %v2180_v58 }
 0x2ce PF: > { %s19_s30 = sadd.s32 1, %s2960_s30  }
 0x2cf   : > { %p16_p4 = scmp.ge.s32.totalorder %s19_s30, 4  }
 0x2d1   :  { %18 = sbr.rel (!%p16_p4) target bundleno = 1 (0x1), region = 97 }

</bundles_post_ra>
